<compile_context>
chip_gen: v7x
topology: tpu7x:2x2x1
jax: 0.10.0
libtpu: 0.0.40
codegen_flags: <defaults>
</compile_context>

<pallas_src>
import functools

import numpy as np
import jax
import jax.numpy as jnp
from jax.experimental import pallas as pl
from jax.experimental.pallas import tpu as pltpu


# ----------------------------------------------------------------------------
# Bilinear resample matrix: R @ v == F.interpolate(v, out, 'bilinear',
# align_corners=False) along one axis.  (Validated in the previous round.)
# ----------------------------------------------------------------------------
def bilinear_matrix(in_size: int, out_size: int) -> np.ndarray:
    if in_size == out_size:
        return np.eye(out_size, dtype=np.float32)
    R = np.zeros((out_size, in_size), dtype=np.float32)
    scale = in_size / out_size
    for i in range(out_size):
        src = (i + 0.5) * scale - 0.5
        if src < 0.0:
            src = 0.0
        i0 = min(int(np.floor(src)), in_size - 1)
        i1 = min(i0 + 1, in_size - 1)
        l1 = src - i0
        R[i, i0] += 1.0 - l1
        R[i, i1] += l1
    return R


# ----------------------------------------------------------------------------
# Pallas kernel: whole SimFusion_3in_DW forward for one batch element.
# All activations are (channels, H*W) with H*W on the lane axis.
# ----------------------------------------------------------------------------
def _simfusion_kernel(x0p_ref, x1_ref, x2_ref,
                      whaar_ref, wdw_ref, bdw_ref, wdownp_ref, bdown_ref,
                      w1_ref, b1_ref, w3_ref, b3_ref, mt_ref, wf_ref, bfuse_ref,
                      out_ref, *, c0, width, apply_cv2, apply_cv3):
    f32 = jnp.float32
    bf16 = jnp.bfloat16

    x0p = x0p_ref[0]                      # (4*C0, HW) bf16  -- polyphases [a;b;c;d]
    x1 = x1_ref[0]                        # (C1,  HW) bf16
    x2 = x2_ref[0]                        # (C2, gHW) bf16
    hw = x0p.shape[1]

    # ---- x[0] branch --------------------------------------------------------
    # polyphases (even/even, even/odd, odd/even, odd/odd) in f32 for the VPU conv
    pa = x0p[0 * c0:1 * c0].astype(f32)
    pb = x0p[1 * c0:2 * c0].astype(f32)
    pc = x0p[2 * c0:3 * c0].astype(f32)
    pd = x0p[3 * c0:4 * c0].astype(f32)

    # shifted taps along the flattened HW lane axis (zero fill); column-0 mask
    # zeroes values that wrapped across a row boundary.
    def shifted(v, s):
        pad = jnp.zeros((v.shape[0], s), f32)
        return jnp.concatenate([pad, v[:, :v.shape[1] - s]], axis=1)

    col = jax.lax.broadcasted_iota(jnp.int32, (c0, hw), 1) % width
    keep = col != 0
    zero = jnp.zeros((c0, hw), f32)

    pbL = jnp.where(keep, shifted(pb, 1), zero)              # x[2m,   2k-1]
    pcU = shifted(pc, width)                                 # x[2m-1, 2k  ]
    pdL = jnp.where(keep, shifted(pd, 1), zero)              # x[2m+1, 2k-1]
    pdU = shifted(pd, width)                                 # x[2m-1, 2k+1]
    pdUL = jnp.where(keep, shifted(pd, width + 1), zero)     # x[2m-1, 2k-1]

    # tap order matches the host-side packing of the (folded) depthwise weights
    taps = (pa, pb, pbL, pc, pcU, pd, pdL, pdU, pdUL)

    # depthwise 3x3 stride-2 conv (+BN bias) + SiLU, per kernel-index o (4 outs/group)
    wdw = wdw_ref[...]                    # (4*C0, 9) f32, rows o-major (o*C0 + c0)
    bdw = bdw_ref[...]                    # (4*C0, 1) f32
    dw_parts = []
    for o in range(4):
        wsl = wdw[o * c0:(o + 1) * c0]    # (C0, 9)
        s = bdw[o * c0:(o + 1) * c0]      # (C0, 1) -> broadcasts over HW
        for t in range(9):
            s = s + taps[t] * wsl[:, t:t + 1]
        dw_parts.append(s * jax.nn.sigmoid(s))               # SiLU, f32
    dw_all = jnp.concatenate(dw_parts, axis=0).astype(bf16)  # (4*C0, HW), o-major

    # cv2_down applied to (DWT_cat + SiLU(DWConv)):
    #   DWT branch folded into W_haar (host side), DWConv branch uses the o-major
    #   column-permuted copy of the same weight.
    x0_pre = (jnp.dot(whaar_ref[...], x0p, preferred_element_type=f32)
              + jnp.dot(wdownp_ref[...], dw_all, preferred_element_type=f32)
              + bdown_ref[...])
    x0b = jnp.maximum(x0_pre, 0.0)                            # (OUT, HW)

    # ---- x[1] branch --------------------------------------------------------
    if apply_cv2:
        x1b = jnp.maximum(
            jnp.dot(w1_ref[...], x1, preferred_element_type=f32) + b1_ref[...], 0.0)
    else:
        x1b = x1.astype(f32)

    # ---- x[2] branch (1x1 conv at low res, then bilinear upsample matmul) ---
    if apply_cv3:
        z = jnp.dot(w3_ref[...], x2, preferred_element_type=f32).astype(bf16)
    else:
        z = x2
    up = jnp.dot(z, mt_ref[...], preferred_element_type=f32)  # (OUT, HW)
    if apply_cv3:
        x2b = jnp.maximum(up + b3_ref[...], 0.0)
    else:
        x2b = up

    # ---- cv_fuse(cat([x0, x1, x2])) -----------------------------------------
    cat = jnp.concatenate([x0b, x1b, x2b], axis=0).astype(bf16)   # (3*OUT, HW)
    y = jnp.dot(wf_ref[...], cat, preferred_element_type=f32) + bfuse_ref[...]
    out_ref[0] = jnp.maximum(y, 0.0)


# ----------------------------------------------------------------------------
# Wrapper: host-side weight folding + layout prep + pallas_call.
# ----------------------------------------------------------------------------
def simfusion_3in_dw_forward(xs, params):
    x0, x1, x2 = xs
    B, C0, H0, W0 = x0.shape
    _, C1, H, W = x1.shape
    _, C2, H2, W2 = x2.shape
    assert H0 == 2 * H and W0 == 2 * W, "x[0] must be 2x the resolution of x[1]"
    out_c = params["cf_w"].shape[0]
    HW, gHW = H * W, H2 * W2
    bf16 = jnp.bfloat16

    apply_cv2 = params["c2_w"] is not None
    apply_cv3 = params["c3_w"] is not None
    if not apply_cv2:
        assert C1 == out_c
    if not apply_cv3:
        assert C2 == out_c

    # ---- activations: NCHW-native (C, HW), no transposes --------------------
    pa = x0[:, :, 0::2, 0::2]
    pb = x0[:, :, 0::2, 1::2]
    pc = x0[:, :, 1::2, 0::2]
    pd = x0[:, :, 1::2, 1::2]
    x0p = jnp.concatenate([pa, pb, pc, pd], axis=1).reshape(B, 4 * C0, HW).astype(bf16)
    x1f = x1.reshape(B, C1, HW).astype(bf16)
    x2f = x2.reshape(B, C2, gHW).astype(bf16)

    # ---- fold Haar DWT + permutations into cv2_down weights (host side) -----
    d2_w = np.asarray(params["d2_w"], np.float32)              # (OUT, 4*C0), native order
    T = 0.5 * np.array([[1, 1, 1, 1],
                        [1, 1, -1, -1],
                        [1, -1, 1, -1],
                        [1, -1, -1, 1]], np.float32)           # subbands x polyphases
    whaar = jnp.asarray(d2_w @ np.kron(T, np.eye(C0, dtype=np.float32)), bf16)
    perm = np.array([c * 4 + o for o in range(4) for c in range(C0)])
    wdownp = jnp.asarray(d2_w[:, perm], bf16)                  # columns in o-major order
    bdown = params["d2_b"].reshape(out_c, 1).astype(jnp.float32)

    # ---- depthwise conv weights packed per tap (o-major rows) ---------------
    dw_w = np.asarray(params["dw_w"], np.float32)              # (4*C0, 3, 3)
    tap_idx = [(1, 1), (1, 2), (1, 0), (2, 1), (0, 1), (2, 2), (2, 0), (0, 2), (0, 0)]
    wdw_np = np.zeros((4 * C0, 9), np.float32)
    for o in range(4):
        for c in range(C0):
            for t, (di, dj) in enumerate(tap_idx):
                wdw_np[o * C0 + c, t] = dw_w[c * 4 + o, di, dj]
    wdw = jnp.asarray(wdw_np)
    bdw = jnp.asarray(np.asarray(params["dw_b"], np.float32)
                      .reshape(C0, 4).T.reshape(4 * C0, 1))

    if apply_cv2:
        w1 = params["c2_w"].astype(bf16)
        b1 = params["c2_b"].reshape(out_c, 1).astype(jnp.float32)
    else:
        w1 = jnp.zeros((out_c, C1), bf16)
        b1 = jnp.zeros((out_c, 1), jnp.float32)
    if apply_cv3:
        w3 = params["c3_w"].astype(bf16)
        b3 = params["c3_b"].reshape(out_c, 1).astype(jnp.float32)
    else:
        w3 = jnp.zeros((out_c, C2), bf16)
        b3 = jnp.zeros((out_c, 1), jnp.float32)

    Rh = bilinear_matrix(H2, H)
    Rw = bilinear_matrix(W2, W)
    mt = jnp.asarray(np.kron(Rh, Rw).T, bf16)                  # (gHW, HW)
    wf = params["cf_w"].astype(bf16)
    bfuse = params["cf_b"].reshape(out_c, 1).astype(jnp.float32)

    kernel = functools.partial(_simfusion_kernel, c0=C0, width=W,
                               apply_cv2=apply_cv2, apply_cv3=apply_cv3)

    out_flat = pl.pallas_call(
        kernel,
        out_shape=jax.ShapeDtypeStruct((B, out_c, HW), jnp.float32),
        grid_spec=pltpu.PrefetchScalarGridSpec(
            num_scalar_prefetch=0,
            grid=(B,),
            in_specs=[
                pl.BlockSpec((1, 4 * C0, HW), lambda b: (b, 0, 0)),   # x0 polyphases
                pl.BlockSpec((1, C1, HW), lambda b: (b, 0, 0)),       # x1
                pl.BlockSpec((1, C2, gHW), lambda b: (b, 0, 0)),      # x2
                pl.BlockSpec((out_c, 4 * C0), lambda b: (0, 0)),      # W_haar
                pl.BlockSpec((4 * C0, 9), lambda b: (0, 0)),          # depthwise taps
                pl.BlockSpec((4 * C0, 1), lambda b: (0, 0)),          # depthwise bias
                pl.BlockSpec((out_c, 4 * C0), lambda b: (0, 0)),      # W_cv2down (perm)
                pl.BlockSpec((out_c, 1), lambda b: (0, 0)),           # b_cv2down
                pl.BlockSpec((out_c, C1), lambda b: (0, 0)),          # W cv2
                pl.BlockSpec((out_c, 1), lambda b: (0, 0)),           # b cv2
                pl.BlockSpec((out_c, C2), lambda b: (0, 0)),          # W cv3
                pl.BlockSpec((out_c, 1), lambda b: (0, 0)),           # b cv3
                pl.BlockSpec((gHW, HW), lambda b: (0, 0)),            # bilinear matrix
                pl.BlockSpec((out_c, 3 * out_c), lambda b: (0, 0)),   # W cv_fuse
                pl.BlockSpec((out_c, 1), lambda b: (0, 0)),           # b cv_fuse
            ],
            out_specs=pl.BlockSpec((1, out_c, HW), lambda b: (b, 0, 0)),
        ),
        compiler_params=pltpu.CompilerParams(
            dimension_semantics=("parallel",),
            vmem_limit_bytes=48 * 1024 * 1024),
    )(x0p, x1f, x2f, whaar, wdw, bdw, wdownp, bdown, w1, b1, w3, b3, mt, wf, bfuse)

    return out_flat.reshape(B, out_c, H, W)


# ----------------------------------------------------------------------------
# Deterministic synthetic eval-mode parameters (Conv2d no-bias + BN folded).
# ----------------------------------------------------------------------------
def _fold_conv_bn(key, cout, cin_per_group, k=1, w_scale=0.1, eps=1e-5):
    k1, k2, k3, k4, k5 = jax.random.split(key, 5)
    shape = (cout, cin_per_group) if k == 1 else (cout, cin_per_group, k, k)
    w = jax.random.normal(k1, shape, jnp.float32) * w_scale
    gamma = jax.random.uniform(k2, (cout,), jnp.float32, 0.5, 1.5)
    beta = jax.random.normal(k3, (cout,), jnp.float32) * 0.1
    mean = jax.random.normal(k4, (cout,), jnp.float32) * 0.1
    var = jax.random.uniform(k5, (cout,), jnp.float32, 0.5, 1.5)
    scale = gamma / jnp.sqrt(var + eps)
    w_eff = w * (scale[:, None] if k == 1 else scale[:, None, None, None])
    b_eff = beta - mean * scale
    return w_eff, b_eff


def make_params(key, in_channel_list, out_c):
    C0, C1, C2 = in_channel_list
    keys = jax.random.split(key, 5)
    p = {}
    wdw, bdw = _fold_conv_bn(keys[0], 4 * C0, 1, k=3)          # DW_down.cv1 (depthwise)
    p["dw_w"], p["dw_b"] = wdw[:, 0], bdw                      # (4C0,3,3), (4C0,)
    p["d2_w"], p["d2_b"] = _fold_conv_bn(keys[1], out_c, 4 * C0)   # DW_down.cv2
    if C1 != out_c:
        p["c2_w"], p["c2_b"] = _fold_conv_bn(keys[2], out_c, C1)   # SimFusion.cv2
    else:
        p["c2_w"], p["c2_b"] = None, None
    if C2 != out_c:
        p["c3_w"], p["c3_b"] = _fold_conv_bn(keys[3], out_c, C2)   # SimFusion.cv3
    else:
        p["c3_w"], p["c3_b"] = None, None
    p["cf_w"], p["cf_b"] = _fold_conv_bn(keys[4], out_c, 3 * out_c)  # cv_fuse
    return p


# ----------------------------------------------------------------------------
# Pure-JAX reference (independent math; mirrors the kernel's bf16 input/weight
# rounding so the comparison tolerance stays tight).
# ----------------------------------------------------------------------------
def reference_forward(xs, params):
    def bfr(t):
        return t.astype(jnp.bfloat16).astype(jnp.float32)

    x0, x1, x2 = xs
    B, C0, H0, W0 = x0.shape
    _, C1, H, W = x1.shape
    _, C2, H2, W2 = x2.shape
    x0, x1, x2 = bfr(x0), bfr(x1), bfr(x2)

    # Haar DWT (J=1, zero mode, even sizes), subband-major concat [LL, s1, s2, s3]
    a = x0[:, :, 0::2, 0::2]; b = x0[:, :, 0::2, 1::2]
    c = x0[:, :, 1::2, 0::2]; d = x0[:, :, 1::2, 1::2]
    dwt = jnp.concatenate([0.5 * (a + b + c + d), 0.5 * (a + b - c - d),
                           0.5 * (a - b + c - d), 0.5 * (a - b - c + d)], axis=1)

    # depthwise 3x3 stride-2 conv + folded BN bias + SiLU
    wdw = params["dw_w"][:, None]                               # (4C0,1,3,3)
    conv = jax.lax.conv_general_dilated(
        x0, wdw, window_strides=(2, 2), padding=((1, 1), (1, 1)),
        feature_group_count=C0, dimension_numbers=("NCHW", "OIHW", "NCHW"))
    conv = conv + params["dw_b"][None, :, None, None]
    dwc = conv * jax.nn.sigmoid(conv)

    x0b = jax.nn.relu(jnp.einsum("oc,bchw->bohw", bfr(params["d2_w"]), dwt + dwc)
                      + params["d2_b"][None, :, None, None])

    if params["c2_w"] is not None:
        x1b = jax.nn.relu(jnp.einsum("oc,bchw->bohw", bfr(params["c2_w"]), x1)
                          + params["c2_b"][None, :, None, None])
    else:
        x1b = x1

    Rh = jnp.asarray(bilinear_matrix(H2, H))
    Rw = jnp.asarray(bilinear_matrix(W2, W))
    x2u = jnp.einsum("Hh,bchw->bcHw", Rh, x2)
    x2u = jnp.einsum("Wx,bchx->bchW", Rw, x2u)
    if params["c3_w"] is not None:
        x2b = jax.nn.relu(jnp.einsum("oc,bchw->bohw", bfr(params["c3_w"]), x2u)
                          + params["c3_b"][None, :, None, None])
    else:
        x2b = x2u

    cat = jnp.concatenate([x0b, x1b, x2b], axis=1)
    y = jnp.einsum("oc,bchw->bohw", bfr(params["cf_w"]), cat) \
        + params["cf_b"][None, :, None, None]
    return jax.nn.relu(y)


# ----------------------------------------------------------------------------
if __name__ == "__main__":
    key = jax.random.PRNGKey(0)
    kx0, kx1, kx2, kp = jax.random.split(key, 4)

    in_channel_list = [8, 24, 12]
    OUT = 32
    B, H, W = 2, 16, 16

    x0 = jax.random.normal(kx0, (B, in_channel_list[0], 2 * H, 2 * W), jnp.float32)
    x1 = jax.random.normal(kx1, (B, in_channel_list[1], H, W), jnp.float32)
    x2 = jax.random.normal(kx2, (B, in_channel_list[2], H // 2, W // 2), jnp.float32)
    params = make_params(kp, in_channel_list, OUT)

    out = simfusion_3in_dw_forward([x0, x1, x2], params)
    out = jax.block_until_ready(out)

    ref = reference_forward([x0, x1, x2], params)
    ref = jax.block_until_ready(ref)

    assert out.shape == (B, OUT, H, W)
    max_diff = float(jnp.max(jnp.abs(out - ref)))
    assert jnp.allclose(out, ref, atol=5e-2, rtol=5e-2), f"mismatch, max|diff|={max_diff}"
    print("KERNEL_OK")
</pallas_src>

<mosaic_0001>
module attributes {stable_mosaic.version = 11 : i64} {
  func.func @_simfusion_kernel(%arg0: i32, %arg1: memref<1x32x256xbf16, #tpu.memory_space<vmem>>, %arg2: memref<1x24x256xbf16, #tpu.memory_space<vmem>>, %arg3: memref<1x12x64xbf16, #tpu.memory_space<vmem>>, %arg4: memref<32x32xbf16, #tpu.memory_space<vmem>>, %arg5: memref<32x9xf32, #tpu.memory_space<vmem>>, %arg6: memref<32x1xf32, #tpu.memory_space<vmem>>, %arg7: memref<32x32xbf16, #tpu.memory_space<vmem>>, %arg8: memref<32x1xf32, #tpu.memory_space<vmem>>, %arg9: memref<32x24xbf16, #tpu.memory_space<vmem>>, %arg10: memref<32x1xf32, #tpu.memory_space<vmem>>, %arg11: memref<32x12xbf16, #tpu.memory_space<vmem>>, %arg12: memref<32x1xf32, #tpu.memory_space<vmem>>, %arg13: memref<64x256xbf16, #tpu.memory_space<vmem>>, %arg14: memref<32x96xbf16, #tpu.memory_space<vmem>>, %arg15: memref<32x1xf32, #tpu.memory_space<vmem>>, %arg16: memref<1x32x256xf32, #tpu.memory_space<vmem>>) attributes {dimension_semantics = [#tpu.dimension_semantics<parallel>], iteration_bounds = array<i64: 2>, scalar_prefetch = 0 : i64, scratch_operands = 0 : i64, tpu.core_type = #tpu.core_type<tc>, window_params = [{transform_indices = @transform_0, window_bounds = array<i64: 1, 32, 256>}, {transform_indices = @transform_1, window_bounds = array<i64: 1, 24, 256>}, {transform_indices = @transform_2, window_bounds = array<i64: 1, 12, 64>}, {pipeline_mode = #tpu.pipeline_mode<synchronous>, transform_indices = @transform_3, window_bounds = array<i64: 32, 32>}, {pipeline_mode = #tpu.pipeline_mode<synchronous>, transform_indices = @transform_4, window_bounds = array<i64: 32, 9>}, {pipeline_mode = #tpu.pipeline_mode<synchronous>, transform_indices = @transform_5, window_bounds = array<i64: 32, 1>}, {pipeline_mode = #tpu.pipeline_mode<synchronous>, transform_indices = @transform_6, window_bounds = array<i64: 32, 32>}, {pipeline_mode = #tpu.pipeline_mode<synchronous>, transform_indices = @transform_7, window_bounds = array<i64: 32, 1>}, {pipeline_mode = #tpu.pipeline_mode<synchronous>, transform_indices = @transform_8, window_bounds = array<i64: 32, 24>}, {pipeline_mode = #tpu.pipeline_mode<synchronous>, transform_indices = @transform_9, window_bounds = array<i64: 32, 1>}, {pipeline_mode = #tpu.pipeline_mode<synchronous>, transform_indices = @transform_10, window_bounds = array<i64: 32, 12>}, {pipeline_mode = #tpu.pipeline_mode<synchronous>, transform_indices = @transform_11, window_bounds = array<i64: 32, 1>}, {pipeline_mode = #tpu.pipeline_mode<synchronous>, transform_indices = @transform_12, window_bounds = array<i64: 64, 256>}, {pipeline_mode = #tpu.pipeline_mode<synchronous>, transform_indices = @transform_13, window_bounds = array<i64: 32, 96>}, {pipeline_mode = #tpu.pipeline_mode<synchronous>, transform_indices = @transform_14, window_bounds = array<i64: 32, 1>}, {transform_indices = @transform_15, window_bounds = array<i64: 1, 32, 256>}]} {
    %c0 = arith.constant 0 : index
    %c0_0 = arith.constant 0 : index
    %c0_1 = arith.constant 0 : index
    %0 = vector.load %arg1[%c0, %c0_0, %c0_1] : memref<1x32x256xbf16, #tpu.memory_space<vmem>>, vector<1x32x256xbf16>
    %1 = vector.shape_cast %0 : vector<1x32x256xbf16> to vector<32x256xbf16>
    %c0_2 = arith.constant 0 : index
    %c0_3 = arith.constant 0 : index
    %c0_4 = arith.constant 0 : index
    %2 = vector.load %arg2[%c0_2, %c0_3, %c0_4] : memref<1x24x256xbf16, #tpu.memory_space<vmem>>, vector<1x24x256xbf16>
    %3 = vector.shape_cast %2 : vector<1x24x256xbf16> to vector<24x256xbf16>
    %c0_5 = arith.constant 0 : index
    %c0_6 = arith.constant 0 : index
    %c0_7 = arith.constant 0 : index
    %4 = vector.load %arg3[%c0_5, %c0_6, %c0_7] : memref<1x12x64xbf16, #tpu.memory_space<vmem>>, vector<1x12x64xbf16>
    %5 = vector.shape_cast %4 : vector<1x12x64xbf16> to vector<12x64xbf16>
    %6 = vector.extract_strided_slice %1 {offsets = [0, 0], sizes = [8, 256], strides = [1, 1]} : vector<32x256xbf16> to vector<8x256xbf16>
    %7 = arith.extf %6 : vector<8x256xbf16> to vector<8x256xf32>
    %8 = vector.extract_strided_slice %1 {offsets = [8, 0], sizes = [8, 256], strides = [1, 1]} : vector<32x256xbf16> to vector<8x256xbf16>
    %9 = arith.extf %8 : vector<8x256xbf16> to vector<8x256xf32>
    %10 = vector.extract_strided_slice %1 {offsets = [16, 0], sizes = [8, 256], strides = [1, 1]} : vector<32x256xbf16> to vector<8x256xbf16>
    %11 = arith.extf %10 : vector<8x256xbf16> to vector<8x256xf32>
    %12 = vector.extract_strided_slice %1 {offsets = [24, 0], sizes = [8, 256], strides = [1, 1]} : vector<32x256xbf16> to vector<8x256xbf16>
    %13 = arith.extf %12 : vector<8x256xbf16> to vector<8x256xf32>
    %14 = tpu.iota {dimensions = array<i32: 1>} : vector<8x256xi32>
    %c16_i32 = arith.constant 16 : i32
    %c0_i32 = arith.constant 0 : i32
    %15 = arith.cmpi eq, %c16_i32, %c0_i32 : i32
    %c1_i32 = arith.constant 1 : i32
    %16 = arith.select %15, %c1_i32, %c16_i32 : i32
    %17 = vector.broadcast %16 : i32 to vector<8x256xi32>
    %18 = arith.remsi %14, %17 : vector<8x256xi32>
    %c0_i32_8 = arith.constant 0 : i32
    %19 = vector.broadcast %c0_i32_8 : i32 to vector<8x256xi32>
    %20 = arith.cmpi ne, %18, %19 : vector<8x256xi32>
    %c0_i32_9 = arith.constant 0 : i32
    %21 = vector.broadcast %c0_i32_9 : i32 to vector<8x256xi32>
    %22 = arith.cmpi slt, %18, %21 : vector<8x256xi32>
    %c0_i32_10 = arith.constant 0 : i32
    %23 = arith.cmpi slt, %16, %c0_i32_10 : i32
    %24 = vector.broadcast %23 : i1 to vector<8x256xi1>
    %25 = vector.broadcast %24 : vector<8x256xi1> to vector<8x256xi1>
    %26 = arith.xori %22, %25 : vector<8x256xi1>
    %27 = arith.andi %26, %20 : vector<8x256xi1>
    %28 = vector.broadcast %16 : i32 to vector<8x256xi32>
    %29 = arith.addi %18, %28 : vector<8x256xi32>
    %30 = arith.select %27, %29, %18 : vector<8x256xi1>, vector<8x256xi32>
    %c0_i32_11 = arith.constant 0 : i32
    %31 = vector.broadcast %c0_i32_11 : i32 to vector<8x256xi32>
    %32 = arith.cmpi ne, %30, %31 : vector<8x256xi32>
    %cst = arith.constant 0.000000e+00 : f32
    %33 = vector.broadcast %cst : f32 to vector<8x256xf32>
    %cst_12 = arith.constant 0.000000e+00 : f32
    %34 = vector.broadcast %cst_12 : f32 to vector<8x1xf32>
    %35 = vector.extract_strided_slice %9 {offsets = [0, 0], sizes = [8, 255], strides = [1, 1]} : vector<8x256xf32> to vector<8x255xf32>
    %36 = tpu.concatenate %34, %35 in 1 : vector<8x1xf32>, vector<8x255xf32> -> vector<8x256xf32>
    %37 = arith.select %32, %36, %33 : vector<8x256xi1>, vector<8x256xf32>
    %cst_13 = arith.constant 0.000000e+00 : f32
    %38 = vector.broadcast %cst_13 : f32 to vector<8x16xf32>
    %39 = vector.extract_strided_slice %11 {offsets = [0, 0], sizes = [8, 240], strides = [1, 1]} : vector<8x256xf32> to vector<8x240xf32>
    %40 = tpu.concatenate %38, %39 in 1 : vector<8x16xf32>, vector<8x240xf32> -> vector<8x256xf32>
    %cst_14 = arith.constant 0.000000e+00 : f32
    %41 = vector.broadcast %cst_14 : f32 to vector<8x1xf32>
    %42 = vector.extract_strided_slice %13 {offsets = [0, 0], sizes = [8, 255], strides = [1, 1]} : vector<8x256xf32> to vector<8x255xf32>
    %43 = tpu.concatenate %41, %42 in 1 : vector<8x1xf32>, vector<8x255xf32> -> vector<8x256xf32>
    %44 = arith.select %32, %43, %33 : vector<8x256xi1>, vector<8x256xf32>
    %cst_15 = arith.constant 0.000000e+00 : f32
    %45 = vector.broadcast %cst_15 : f32 to vector<8x16xf32>
    %46 = vector.extract_strided_slice %13 {offsets = [0, 0], sizes = [8, 240], strides = [1, 1]} : vector<8x256xf32> to vector<8x240xf32>
    %47 = tpu.concatenate %45, %46 in 1 : vector<8x16xf32>, vector<8x240xf32> -> vector<8x256xf32>
    %cst_16 = arith.constant 0.000000e+00 : f32
    %48 = vector.broadcast %cst_16 : f32 to vector<8x17xf32>
    %49 = vector.extract_strided_slice %13 {offsets = [0, 0], sizes = [8, 239], strides = [1, 1]} : vector<8x256xf32> to vector<8x239xf32>
    %50 = tpu.concatenate %48, %49 in 1 : vector<8x17xf32>, vector<8x239xf32> -> vector<8x256xf32>
    %51 = arith.select %32, %50, %33 : vector<8x256xi1>, vector<8x256xf32>
    %c0_17 = arith.constant 0 : index
    %c0_18 = arith.constant 0 : index
    %52 = vector.load %arg5[%c0_17, %c0_18] : memref<32x9xf32, #tpu.memory_space<vmem>>, vector<32x9xf32>
    %c0_19 = arith.constant 0 : index
    %c0_20 = arith.constant 0 : index
    %53 = vector.load %arg6[%c0_19, %c0_20] : memref<32x1xf32, #tpu.memory_space<vmem>>, vector<32x1xf32>
    %54 = vector.extract_strided_slice %52 {offsets = [0, 0], sizes = [8, 9], strides = [1, 1]} : vector<32x9xf32> to vector<8x9xf32>
    %55 = vector.extract_strided_slice %53 {offsets = [0, 0], sizes = [8, 1], strides = [1, 1]} : vector<32x1xf32> to vector<8x1xf32>
    %56 = vector.extract_strided_slice %54 {offsets = [0, 0], sizes = [8, 1], strides = [1, 1]} : vector<8x9xf32> to vector<8x1xf32>
    %57 = vector.broadcast %56 : vector<8x1xf32> to vector<8x256xf32>
    %58 = arith.mulf %7, %57 : vector<8x256xf32>
    %59 = vector.broadcast %55 : vector<8x1xf32> to vector<8x256xf32>
    %60 = arith.addf %59, %58 : vector<8x256xf32>
    %61 = vector.extract_strided_slice %54 {offsets = [0, 1], sizes = [8, 1], strides = [1, 1]} : vector<8x9xf32> to vector<8x1xf32>
    %62 = vector.broadcast %61 : vector<8x1xf32> to vector<8x256xf32>
    %63 = arith.mulf %9, %62 : vector<8x256xf32>
    %64 = arith.addf %60, %63 : vector<8x256xf32>
    %65 = vector.extract_strided_slice %54 {offsets = [0, 2], sizes = [8, 1], strides = [1, 1]} : vector<8x9xf32> to vector<8x1xf32>
    %66 = vector.broadcast %65 : vector<8x1xf32> to vector<8x256xf32>
    %67 = arith.mulf %37, %66 : vector<8x256xf32>
    %68 = arith.addf %64, %67 : vector<8x256xf32>
    %69 = vector.extract_strided_slice %54 {offsets = [0, 3], sizes = [8, 1], strides = [1, 1]} : vector<8x9xf32> to vector<8x1xf32>
    %70 = vector.broadcast %69 : vector<8x1xf32> to vector<8x256xf32>
    %71 = arith.mulf %11, %70 : vector<8x256xf32>
    %72 = arith.addf %68, %71 : vector<8x256xf32>
    %73 = vector.extract_strided_slice %54 {offsets = [0, 4], sizes = [8, 1], strides = [1, 1]} : vector<8x9xf32> to vector<8x1xf32>
    %74 = vector.broadcast %73 : vector<8x1xf32> to vector<8x256xf32>
    %75 = arith.mulf %40, %74 : vector<8x256xf32>
    %76 = arith.addf %72, %75 : vector<8x256xf32>
    %77 = vector.extract_strided_slice %54 {offsets = [0, 5], sizes = [8, 1], strides = [1, 1]} : vector<8x9xf32> to vector<8x1xf32>
    %78 = vector.broadcast %77 : vector<8x1xf32> to vector<8x256xf32>
    %79 = arith.mulf %13, %78 : vector<8x256xf32>
    %80 = arith.addf %76, %79 : vector<8x256xf32>
    %81 = vector.extract_strided_slice %54 {offsets = [0, 6], sizes = [8, 1], strides = [1, 1]} : vector<8x9xf32> to vector<8x1xf32>
    %82 = vector.broadcast %81 : vector<8x1xf32> to vector<8x256xf32>
    %83 = arith.mulf %44, %82 : vector<8x256xf32>
    %84 = arith.addf %80, %83 : vector<8x256xf32>
    %85 = vector.extract_strided_slice %54 {offsets = [0, 7], sizes = [8, 1], strides = [1, 1]} : vector<8x9xf32> to vector<8x1xf32>
    %86 = vector.broadcast %85 : vector<8x1xf32> to vector<8x256xf32>
    %87 = arith.mulf %47, %86 : vector<8x256xf32>
    %88 = arith.addf %84, %87 : vector<8x256xf32>
    %89 = vector.extract_strided_slice %54 {offsets = [0, 8], sizes = [8, 1], strides = [1, 1]} : vector<8x9xf32> to vector<8x1xf32>
    %90 = vector.broadcast %89 : vector<8x1xf32> to vector<8x256xf32>
    %91 = arith.mulf %51, %90 : vector<8x256xf32>
    %92 = arith.addf %88, %91 : vector<8x256xf32>
    %93 = arith.negf %92 : vector<8x256xf32>
    %94 = math.exp %93 : vector<8x256xf32>
    %cst_21 = arith.constant 1.000000e+00 : f32
    %95 = vector.broadcast %cst_21 : f32 to vector<8x256xf32>
    %96 = arith.addf %95, %94 : vector<8x256xf32>
    %97 = arith.divf %95, %96 : vector<8x256xf32>
    %98 = arith.mulf %92, %97 : vector<8x256xf32>
    %99 = vector.extract_strided_slice %52 {offsets = [8, 0], sizes = [8, 9], strides = [1, 1]} : vector<32x9xf32> to vector<8x9xf32>
    %100 = vector.extract_strided_slice %53 {offsets = [8, 0], sizes = [8, 1], strides = [1, 1]} : vector<32x1xf32> to vector<8x1xf32>
    %101 = vector.extract_strided_slice %99 {offsets = [0, 0], sizes = [8, 1], strides = [1, 1]} : vector<8x9xf32> to vector<8x1xf32>
    %102 = vector.broadcast %101 : vector<8x1xf32> to vector<8x256xf32>
    %103 = arith.mulf %7, %102 : vector<8x256xf32>
    %104 = vector.broadcast %100 : vector<8x1xf32> to vector<8x256xf32>
    %105 = arith.addf %104, %103 : vector<8x256xf32>
    %106 = vector.extract_strided_slice %99 {offsets = [0, 1], sizes = [8, 1], strides = [1, 1]} : vector<8x9xf32> to vector<8x1xf32>
    %107 = vector.broadcast %106 : vector<8x1xf32> to vector<8x256xf32>
    %108 = arith.mulf %9, %107 : vector<8x256xf32>
    %109 = arith.addf %105, %108 : vector<8x256xf32>
    %110 = vector.extract_strided_slice %99 {offsets = [0, 2], sizes = [8, 1], strides = [1, 1]} : vector<8x9xf32> to vector<8x1xf32>
    %111 = vector.broadcast %110 : vector<8x1xf32> to vector<8x256xf32>
    %112 = arith.mulf %37, %111 : vector<8x256xf32>
    %113 = arith.addf %109, %112 : vector<8x256xf32>
    %114 = vector.extract_strided_slice %99 {offsets = [0, 3], sizes = [8, 1], strides = [1, 1]} : vector<8x9xf32> to vector<8x1xf32>
    %115 = vector.broadcast %114 : vector<8x1xf32> to vector<8x256xf32>
    %116 = arith.mulf %11, %115 : vector<8x256xf32>
    %117 = arith.addf %113, %116 : vector<8x256xf32>
    %118 = vector.extract_strided_slice %99 {offsets = [0, 4], sizes = [8, 1], strides = [1, 1]} : vector<8x9xf32> to vector<8x1xf32>
    %119 = vector.broadcast %118 : vector<8x1xf32> to vector<8x256xf32>
    %120 = arith.mulf %40, %119 : vector<8x256xf32>
    %121 = arith.addf %117, %120 : vector<8x256xf32>
    %122 = vector.extract_strided_slice %99 {offsets = [0, 5], sizes = [8, 1], strides = [1, 1]} : vector<8x9xf32> to vector<8x1xf32>
    %123 = vector.broadcast %122 : vector<8x1xf32> to vector<8x256xf32>
    %124 = arith.mulf %13, %123 : vector<8x256xf32>
    %125 = arith.addf %121, %124 : vector<8x256xf32>
    %126 = vector.extract_strided_slice %99 {offsets = [0, 6], sizes = [8, 1], strides = [1, 1]} : vector<8x9xf32> to vector<8x1xf32>
    %127 = vector.broadcast %126 : vector<8x1xf32> to vector<8x256xf32>
    %128 = arith.mulf %44, %127 : vector<8x256xf32>
    %129 = arith.addf %125, %128 : vector<8x256xf32>
    %130 = vector.extract_strided_slice %99 {offsets = [0, 7], sizes = [8, 1], strides = [1, 1]} : vector<8x9xf32> to vector<8x1xf32>
    %131 = vector.broadcast %130 : vector<8x1xf32> to vector<8x256xf32>
    %132 = arith.mulf %47, %131 : vector<8x256xf32>
    %133 = arith.addf %129, %132 : vector<8x256xf32>
    %134 = vector.extract_strided_slice %99 {offsets = [0, 8], sizes = [8, 1], strides = [1, 1]} : vector<8x9xf32> to vector<8x1xf32>
    %135 = vector.broadcast %134 : vector<8x1xf32> to vector<8x256xf32>
    %136 = arith.mulf %51, %135 : vector<8x256xf32>
    %137 = arith.addf %133, %136 : vector<8x256xf32>
    %138 = arith.negf %137 : vector<8x256xf32>
    %139 = math.exp %138 : vector<8x256xf32>
    %cst_22 = arith.constant 1.000000e+00 : f32
    %140 = vector.broadcast %cst_22 : f32 to vector<8x256xf32>
    %141 = arith.addf %140, %139 : vector<8x256xf32>
    %142 = arith.divf %140, %141 : vector<8x256xf32>
    %143 = arith.mulf %137, %142 : vector<8x256xf32>
    %144 = vector.extract_strided_slice %52 {offsets = [16, 0], sizes = [8, 9], strides = [1, 1]} : vector<32x9xf32> to vector<8x9xf32>
    %145 = vector.extract_strided_slice %53 {offsets = [16, 0], sizes = [8, 1], strides = [1, 1]} : vector<32x1xf32> to vector<8x1xf32>
    %146 = vector.extract_strided_slice %144 {offsets = [0, 0], sizes = [8, 1], strides = [1, 1]} : vector<8x9xf32> to vector<8x1xf32>
    %147 = vector.broadcast %146 : vector<8x1xf32> to vector<8x256xf32>
    %148 = arith.mulf %7, %147 : vector<8x256xf32>
    %149 = vector.broadcast %145 : vector<8x1xf32> to vector<8x256xf32>
    %150 = arith.addf %149, %148 : vector<8x256xf32>
    %151 = vector.extract_strided_slice %144 {offsets = [0, 1], sizes = [8, 1], strides = [1, 1]} : vector<8x9xf32> to vector<8x1xf32>
    %152 = vector.broadcast %151 : vector<8x1xf32> to vector<8x256xf32>
    %153 = arith.mulf %9, %152 : vector<8x256xf32>
    %154 = arith.addf %150, %153 : vector<8x256xf32>
    %155 = vector.extract_strided_slice %144 {offsets = [0, 2], sizes = [8, 1], strides = [1, 1]} : vector<8x9xf32> to vector<8x1xf32>
    %156 = vector.broadcast %155 : vector<8x1xf32> to vector<8x256xf32>
    %157 = arith.mulf %37, %156 : vector<8x256xf32>
    %158 = arith.addf %154, %157 : vector<8x256xf32>
    %159 = vector.extract_strided_slice %144 {offsets = [0, 3], sizes = [8, 1], strides = [1, 1]} : vector<8x9xf32> to vector<8x1xf32>
    %160 = vector.broadcast %159 : vector<8x1xf32> to vector<8x256xf32>
    %161 = arith.mulf %11, %160 : vector<8x256xf32>
    %162 = arith.addf %158, %161 : vector<8x256xf32>
    %163 = vector.extract_strided_slice %144 {offsets = [0, 4], sizes = [8, 1], strides = [1, 1]} : vector<8x9xf32> to vector<8x1xf32>
    %164 = vector.broadcast %163 : vector<8x1xf32> to vector<8x256xf32>
    %165 = arith.mulf %40, %164 : vector<8x256xf32>
    %166 = arith.addf %162, %165 : vector<8x256xf32>
    %167 = vector.extract_strided_slice %144 {offsets = [0, 5], sizes = [8, 1], strides = [1, 1]} : vector<8x9xf32> to vector<8x1xf32>
    %168 = vector.broadcast %167 : vector<8x1xf32> to vector<8x256xf32>
    %169 = arith.mulf %13, %168 : vector<8x256xf32>
    %170 = arith.addf %166, %169 : vector<8x256xf32>
    %171 = vector.extract_strided_slice %144 {offsets = [0, 6], sizes = [8, 1], strides = [1, 1]} : vector<8x9xf32> to vector<8x1xf32>
    %172 = vector.broadcast %171 : vector<8x1xf32> to vector<8x256xf32>
    %173 = arith.mulf %44, %172 : vector<8x256xf32>
    %174 = arith.addf %170, %173 : vector<8x256xf32>
    %175 = vector.extract_strided_slice %144 {offsets = [0, 7], sizes = [8, 1], strides = [1, 1]} : vector<8x9xf32> to vector<8x1xf32>
    %176 = vector.broadcast %175 : vector<8x1xf32> to vector<8x256xf32>
    %177 = arith.mulf %47, %176 : vector<8x256xf32>
    %178 = arith.addf %174, %177 : vector<8x256xf32>
    %179 = vector.extract_strided_slice %144 {offsets = [0, 8], sizes = [8, 1], strides = [1, 1]} : vector<8x9xf32> to vector<8x1xf32>
    %180 = vector.broadcast %179 : vector<8x1xf32> to vector<8x256xf32>
    %181 = arith.mulf %51, %180 : vector<8x256xf32>
    %182 = arith.addf %178, %181 : vector<8x256xf32>
    %183 = arith.negf %182 : vector<8x256xf32>
    %184 = math.exp %183 : vector<8x256xf32>
    %cst_23 = arith.constant 1.000000e+00 : f32
    %185 = vector.broadcast %cst_23 : f32 to vector<8x256xf32>
    %186 = arith.addf %185, %184 : vector<8x256xf32>
    %187 = arith.divf %185, %186 : vector<8x256xf32>
    %188 = arith.mulf %182, %187 : vector<8x256xf32>
    %189 = vector.extract_strided_slice %52 {offsets = [24, 0], sizes = [8, 9], strides = [1, 1]} : vector<32x9xf32> to vector<8x9xf32>
    %190 = vector.extract_strided_slice %53 {offsets = [24, 0], sizes = [8, 1], strides = [1, 1]} : vector<32x1xf32> to vector<8x1xf32>
    %191 = vector.extract_strided_slice %189 {offsets = [0, 0], sizes = [8, 1], strides = [1, 1]} : vector<8x9xf32> to vector<8x1xf32>
    %192 = vector.broadcast %191 : vector<8x1xf32> to vector<8x256xf32>
    %193 = arith.mulf %7, %192 : vector<8x256xf32>
    %194 = vector.broadcast %190 : vector<8x1xf32> to vector<8x256xf32>
    %195 = arith.addf %194, %193 : vector<8x256xf32>
    %196 = vector.extract_strided_slice %189 {offsets = [0, 1], sizes = [8, 1], strides = [1, 1]} : vector<8x9xf32> to vector<8x1xf32>
    %197 = vector.broadcast %196 : vector<8x1xf32> to vector<8x256xf32>
    %198 = arith.mulf %9, %197 : vector<8x256xf32>
    %199 = arith.addf %195, %198 : vector<8x256xf32>
    %200 = vector.extract_strided_slice %189 {offsets = [0, 2], sizes = [8, 1], strides = [1, 1]} : vector<8x9xf32> to vector<8x1xf32>
    %201 = vector.broadcast %200 : vector<8x1xf32> to vector<8x256xf32>
    %202 = arith.mulf %37, %201 : vector<8x256xf32>
    %203 = arith.addf %199, %202 : vector<8x256xf32>
    %204 = vector.extract_strided_slice %189 {offsets = [0, 3], sizes = [8, 1], strides = [1, 1]} : vector<8x9xf32> to vector<8x1xf32>
    %205 = vector.broadcast %204 : vector<8x1xf32> to vector<8x256xf32>
    %206 = arith.mulf %11, %205 : vector<8x256xf32>
    %207 = arith.addf %203, %206 : vector<8x256xf32>
    %208 = vector.extract_strided_slice %189 {offsets = [0, 4], sizes = [8, 1], strides = [1, 1]} : vector<8x9xf32> to vector<8x1xf32>
    %209 = vector.broadcast %208 : vector<8x1xf32> to vector<8x256xf32>
    %210 = arith.mulf %40, %209 : vector<8x256xf32>
    %211 = arith.addf %207, %210 : vector<8x256xf32>
    %212 = vector.extract_strided_slice %189 {offsets = [0, 5], sizes = [8, 1], strides = [1, 1]} : vector<8x9xf32> to vector<8x1xf32>
    %213 = vector.broadcast %212 : vector<8x1xf32> to vector<8x256xf32>
    %214 = arith.mulf %13, %213 : vector<8x256xf32>
    %215 = arith.addf %211, %214 : vector<8x256xf32>
    %216 = vector.extract_strided_slice %189 {offsets = [0, 6], sizes = [8, 1], strides = [1, 1]} : vector<8x9xf32> to vector<8x1xf32>
    %217 = vector.broadcast %216 : vector<8x1xf32> to vector<8x256xf32>
    %218 = arith.mulf %44, %217 : vector<8x256xf32>
    %219 = arith.addf %215, %218 : vector<8x256xf32>
    %220 = vector.extract_strided_slice %189 {offsets = [0, 7], sizes = [8, 1], strides = [1, 1]} : vector<8x9xf32> to vector<8x1xf32>
    %221 = vector.broadcast %220 : vector<8x1xf32> to vector<8x256xf32>
    %222 = arith.mulf %47, %221 : vector<8x256xf32>
    %223 = arith.addf %219, %222 : vector<8x256xf32>
    %224 = vector.extract_strided_slice %189 {offsets = [0, 8], sizes = [8, 1], strides = [1, 1]} : vector<8x9xf32> to vector<8x1xf32>
    %225 = vector.broadcast %224 : vector<8x1xf32> to vector<8x256xf32>
    %226 = arith.mulf %51, %225 : vector<8x256xf32>
    %227 = arith.addf %223, %226 : vector<8x256xf32>
    %228 = arith.negf %227 : vector<8x256xf32>
    %229 = math.exp %228 : vector<8x256xf32>
    %cst_24 = arith.constant 1.000000e+00 : f32
    %230 = vector.broadcast %cst_24 : f32 to vector<8x256xf32>
    %231 = arith.addf %230, %229 : vector<8x256xf32>
    %232 = arith.divf %230, %231 : vector<8x256xf32>
    %233 = arith.mulf %227, %232 : vector<8x256xf32>
    %234 = tpu.concatenate %98, %143, %188, %233 in 0 : vector<8x256xf32>, vector<8x256xf32>, vector<8x256xf32>, vector<8x256xf32> -> vector<32x256xf32>
    %235 = arith.truncf %234 : vector<32x256xf32> to vector<32x256xbf16>
    %c0_25 = arith.constant 0 : index
    %c0_26 = arith.constant 0 : index
    %236 = vector.load %arg4[%c0_25, %c0_26] : memref<32x32xbf16, #tpu.memory_space<vmem>>, vector<32x32xbf16>
    %cst_27 = arith.constant dense<0.000000e+00> : vector<32x256xf32>
    %237 = tpu.matmul %236, %1, %cst_27 {dimension_numbers = #tpu.dot_dimension_numbers<[1], [0], [0], [1], [0, 0, 1, 1], [], []>} : vector<32x32xbf16>, vector<32x256xbf16>, vector<32x256xf32> -> vector<32x256xf32>
    %c0_28 = arith.constant 0 : index
    %c0_29 = arith.constant 0 : index
    %238 = vector.load %arg7[%c0_28, %c0_29] : memref<32x32xbf16, #tpu.memory_space<vmem>>, vector<32x32xbf16>
    %cst_30 = arith.constant dense<0.000000e+00> : vector<32x256xf32>
    %239 = tpu.matmul %238, %235, %cst_30 {dimension_numbers = #tpu.dot_dimension_numbers<[1], [0], [0], [1], [0, 0, 1, 1], [], []>} : vector<32x32xbf16>, vector<32x256xbf16>, vector<32x256xf32> -> vector<32x256xf32>
    %240 = arith.addf %237, %239 : vector<32x256xf32>
    %c0_31 = arith.constant 0 : index
    %c0_32 = arith.constant 0 : index
    %241 = vector.load %arg8[%c0_31, %c0_32] : memref<32x1xf32, #tpu.memory_space<vmem>>, vector<32x1xf32>
    %242 = vector.broadcast %241 : vector<32x1xf32> to vector<32x256xf32>
    %243 = arith.addf %240, %242 : vector<32x256xf32>
    %cst_33 = arith.constant 0.000000e+00 : f32
    %244 = vector.broadcast %cst_33 : f32 to vector<32x256xf32>
    %245 = arith.maximumf %243, %244 : vector<32x256xf32>
    %c0_34 = arith.constant 0 : index
    %c0_35 = arith.constant 0 : index
    %246 = vector.load %arg9[%c0_34, %c0_35] : memref<32x24xbf16, #tpu.memory_space<vmem>>, vector<32x24xbf16>
    %cst_36 = arith.constant dense<0.000000e+00> : vector<32x256xf32>
    %247 = tpu.matmul %246, %3, %cst_36 {dimension_numbers = #tpu.dot_dimension_numbers<[1], [0], [0], [1], [0, 0, 1, 1], [], []>} : vector<32x24xbf16>, vector<24x256xbf16>, vector<32x256xf32> -> vector<32x256xf32>
    %c0_37 = arith.constant 0 : index
    %c0_38 = arith.constant 0 : index
    %248 = vector.load %arg10[%c0_37, %c0_38] : memref<32x1xf32, #tpu.memory_space<vmem>>, vector<32x1xf32>
    %249 = vector.broadcast %248 : vector<32x1xf32> to vector<32x256xf32>
    %250 = arith.addf %247, %249 : vector<32x256xf32>
    %cst_39 = arith.constant 0.000000e+00 : f32
    %251 = vector.broadcast %cst_39 : f32 to vector<32x256xf32>
    %252 = arith.maximumf %250, %251 : vector<32x256xf32>
    %c0_40 = arith.constant 0 : index
    %c0_41 = arith.constant 0 : index
    %253 = vector.load %arg11[%c0_40, %c0_41] : memref<32x12xbf16, #tpu.memory_space<vmem>>, vector<32x12xbf16>
    %cst_42 = arith.constant dense<0.000000e+00> : vector<32x64xf32>
    %254 = tpu.matmul %253, %5, %cst_42 {dimension_numbers = #tpu.dot_dimension_numbers<[1], [0], [0], [1], [0, 0, 1, 1], [], []>} : vector<32x12xbf16>, vector<12x64xbf16>, vector<32x64xf32> -> vector<32x64xf32>
    %255 = arith.truncf %254 : vector<32x64xf32> to vector<32x64xbf16>
    %c0_43 = arith.constant 0 : index
    %c0_44 = arith.constant 0 : index
    %256 = vector.load %arg13[%c0_43, %c0_44] : memref<64x256xbf16, #tpu.memory_space<vmem>>, vector<64x256xbf16>
    %cst_45 = arith.constant dense<0.000000e+00> : vector<32x256xf32>
    %257 = tpu.matmul %255, %256, %cst_45 {dimension_numbers = #tpu.dot_dimension_numbers<[1], [0], [0], [1], [0, 0, 1, 1], [], []>} : vector<32x64xbf16>, vector<64x256xbf16>, vector<32x256xf32> -> vector<32x256xf32>
    %c0_46 = arith.constant 0 : index
    %c0_47 = arith.constant 0 : index
    %258 = vector.load %arg12[%c0_46, %c0_47] : memref<32x1xf32, #tpu.memory_space<vmem>>, vector<32x1xf32>
    %259 = vector.broadcast %258 : vector<32x1xf32> to vector<32x256xf32>
    %260 = arith.addf %257, %259 : vector<32x256xf32>
    %cst_48 = arith.constant 0.000000e+00 : f32
    %261 = vector.broadcast %cst_48 : f32 to vector<32x256xf32>
    %262 = arith.maximumf %260, %261 : vector<32x256xf32>
    %263 = tpu.concatenate %245, %252, %262 in 0 : vector<32x256xf32>, vector<32x256xf32>, vector<32x256xf32> -> vector<96x256xf32>
    %264 = arith.truncf %263 : vector<96x256xf32> to vector<96x256xbf16>
    %c0_49 = arith.constant 0 : index
    %c0_50 = arith.constant 0 : index
    %265 = vector.load %arg14[%c0_49, %c0_50] : memref<32x96xbf16, #tpu.memory_space<vmem>>, vector<32x96xbf16>
    %cst_51 = arith.constant dense<0.000000e+00> : vector<32x256xf32>
    %266 = tpu.matmul %265, %264, %cst_51 {dimension_numbers = #tpu.dot_dimension_numbers<[1], [0], [0], [1], [0, 0, 1, 1], [], []>} : vector<32x96xbf16>, vector<96x256xbf16>, vector<32x256xf32> -> vector<32x256xf32>
    %c0_52 = arith.constant 0 : index
    %c0_53 = arith.constant 0 : index
    %267 = vector.load %arg15[%c0_52, %c0_53] : memref<32x1xf32, #tpu.memory_space<vmem>>, vector<32x1xf32>
    %268 = vector.broadcast %267 : vector<32x1xf32> to vector<32x256xf32>
    %269 = arith.addf %266, %268 : vector<32x256xf32>
    %cst_54 = arith.constant 0.000000e+00 : f32
    %270 = vector.broadcast %cst_54 : f32 to vector<32x256xf32>
    %271 = arith.maximumf %269, %270 : vector<32x256xf32>
    %c0_55 = arith.constant 0 : index
    %c0_56 = arith.constant 0 : index
    %c0_57 = arith.constant 0 : index
    %272 = vector.load %arg16[%c0_55, %c0_56, %c0_57] : memref<1x32x256xf32, #tpu.memory_space<vmem>>, vector<1x32x256xf32>
    %273 = vector.shape_cast %272 : vector<1x32x256xf32> to vector<32x256xf32>
    %274 = vector.shape_cast %271 : vector<32x256xf32> to vector<1x32x256xf32>
    tpu.vector_store %arg16[%c0_55, %c0_56, %c0_57], %274 {strides = array<i32>} : memref<1x32x256xf32, #tpu.memory_space<vmem>>, vector<1x32x256xf32>,
    return
  }
  func.func @transform_0(%arg0: i32) -> (i32, i32, i32) {
    %c0_i32 = arith.constant 0 : i32
    %c0_i32_0 = arith.constant 0 : i32
    %c0_i32_1 = arith.constant 0 : i32
    return %arg0, %c0_i32, %c0_i32_0 : i32, i32, i32
  }
  func.func @transform_1(%arg0: i32) -> (i32, i32, i32) {
    %c0_i32 = arith.constant 0 : i32
    %c0_i32_0 = arith.constant 0 : i32
    %c0_i32_1 = arith.constant 0 : i32
    return %arg0, %c0_i32, %c0_i32_0 : i32, i32, i32
  }
  func.func @transform_2(%arg0: i32) -> (i32, i32, i32) {
    %c0_i32 = arith.constant 0 : i32
    %c0_i32_0 = arith.constant 0 : i32
    %c0_i32_1 = arith.constant 0 : i32
    return %arg0, %c0_i32, %c0_i32_0 : i32, i32, i32
  }
  func.func @transform_3(%arg0: i32) -> (i32, i32) {
    %c0_i32 = arith.constant 0 : i32
    %c0_i32_0 = arith.constant 0 : i32
    %c0_i32_1 = arith.constant 0 : i32
    return %c0_i32, %c0_i32_0 : i32, i32
  }
  func.func @transform_4(%arg0: i32) -> (i32, i32) {
    %c0_i32 = arith.constant 0 : i32
    %c0_i32_0 = arith.constant 0 : i32
    %c0_i32_1 = arith.constant 0 : i32
    return %c0_i32, %c0_i32_0 : i32, i32
  }
  func.func @transform_5(%arg0: i32) -> (i32, i32) {
    %c0_i32 = arith.constant 0 : i32
    %c0_i32_0 = arith.constant 0 : i32
    %c0_i32_1 = arith.constant 0 : i32
    return %c0_i32, %c0_i32_0 : i32, i32
  }
  func.func @transform_6(%arg0: i32) -> (i32, i32) {
    %c0_i32 = arith.constant 0 : i32
    %c0_i32_0 = arith.constant 0 : i32
    %c0_i32_1 = arith.constant 0 : i32
    return %c0_i32, %c0_i32_0 : i32, i32
  }
  func.func @transform_7(%arg0: i32) -> (i32, i32) {
    %c0_i32 = arith.constant 0 : i32
    %c0_i32_0 = arith.constant 0 : i32
    %c0_i32_1 = arith.constant 0 : i32
    return %c0_i32, %c0_i32_0 : i32, i32
  }
  func.func @transform_8(%arg0: i32) -> (i32, i32) {
    %c0_i32 = arith.constant 0 : i32
    %c0_i32_0 = arith.constant 0 : i32
    %c0_i32_1 = arith.constant 0 : i32
    return %c0_i32, %c0_i32_0 : i32, i32
  }
  func.func @transform_9(%arg0: i32) -> (i32, i32) {
    %c0_i32 = arith.constant 0 : i32
    %c0_i32_0 = arith.constant 0 : i32
    %c0_i32_1 = arith.constant 0 : i32
    return %c0_i32, %c0_i32_0 : i32, i32
  }
  func.func @transform_10(%arg0: i32) -> (i32, i32) {
    %c0_i32 = arith.constant 0 : i32
    %c0_i32_0 = arith.constant 0 : i32
    %c0_i32_1 = arith.constant 0 : i32
    return %c0_i32, %c0_i32_0 : i32, i32
  }
  func.func @transform_11(%arg0: i32) -> (i32, i32) {
    %c0_i32 = arith.constant 0 : i32
    %c0_i32_0 = arith.constant 0 : i32
    %c0_i32_1 = arith.constant 0 : i32
    return %c0_i32, %c0_i32_0 : i32, i32
  }
  func.func @transform_12(%arg0: i32) -> (i32, i32) {
    %c0_i32 = arith.constant 0 : i32
    %c0_i32_0 = arith.constant 0 : i32
    %c0_i32_1 = arith.constant 0 : i32
    return %c0_i32, %c0_i32_0 : i32, i32
  }
  func.func @transform_13(%arg0: i32) -> (i32, i32) {
    %c0_i32 = arith.constant 0 : i32
    %c0_i32_0 = arith.constant 0 : i32
    %c0_i32_1 = arith.constant 0 : i32
    return %c0_i32, %c0_i32_0 : i32, i32
  }
  func.func @transform_14(%arg0: i32) -> (i32, i32) {
    %c0_i32 = arith.constant 0 : i32
    %c0_i32_0 = arith.constant 0 : i32
    %c0_i32_1 = arith.constant 0 : i32
    return %c0_i32, %c0_i32_0 : i32, i32
  }
  func.func @transform_15(%arg0: i32) -> (i32, i32, i32) {
    %c0_i32 = arith.constant 0 : i32
    %c0_i32_0 = arith.constant 0 : i32
    %c0_i32_1 = arith.constant 0 : i32
    return %arg0, %c0_i32, %c0_i32_0 : i32, i32, i32
  }
}

</mosaic_0001>

<bundles_post_ra>
// kernel: tpu_custom_call.1
= control target key start
LH: loop header
LB: loop body
LE: loop exit
PB: predicated region body
PF: predicated region fallthrough
CT: control target
= control target key end

     0   :  { %20 = vsyncpa [#allocation3], 0  ;;  %s2814_s0 = inlined_call_operand.vmem [shape: bf16[2,32,256], index: 0, kind: input, shape index: {}]   ;;  %s2815_s1 = inlined_call_operand.vmem [shape: bf16[2,24,256], index: 1, kind: input, shape index: {}]   ;;  %s2816_s2 = inlined_call_operand.vmem [shape: bf16[2,12,64], index: 2, kind: input, shape index: {}]   ;;  %s2817_s3 = inlined_call_operand.vmem [shape: bf16[32,32], index: 3, kind: input, shape index: {}]   ;;  %s2818_s4 = inlined_call_operand.vmem [shape: f32[32,9], index: 4, kind: input, shape index: {}]   ;;  %s2819_s5 = inlined_call_operand.vmem [shape: f32[32,1], index: 5, kind: input, shape index: {}]   ;;  %s2820_s6 = inlined_call_operand.vmem [shape: bf16[32,32], index: 6, kind: input, shape index: {}]   ;;  %s2821_s7 = inlined_call_operand.vmem [shape: f32[32,1], index: 7, kind: input, shape index: {}]   ;;  %s2822_s8 = inlined_call_operand.vmem [shape: bf16[32,24], index: 8, kind: input, shape index: {}]   ;;  %s2823_s9 = inlined_call_operand.vmem [shape: f32[32,1], index: 9, kind: input, shape index: {}]   ;;  %s2824_s10 = inlined_call_operand.vmem [shape: bf16[32,12], index: 10, kind: input, shape index: {}]   ;;  %s2825_s11 = inlined_call_operand.vmem [shape: f32[32,1], index: 11, kind: input, shape index: {}]   ;;  %s2826_s12 = inlined_call_operand.vmem [shape: bf16[64,256], index: 12, kind: input, shape index: {}]   ;;  %s2827_s13 = inlined_call_operand.vmem [shape: bf16[32,96], index: 13, kind: input, shape index: {}]   ;;  %s2828_s14 = inlined_call_operand.vmem [shape: f32[32,1], index: 14, kind: input, shape index: {}]   ;;  %s2829_s15 = inlined_call_operand.hbm [shape: f32[2,32,256], index: 15, kind: output, shape index: {}]  }
   0x1   :  { %22 = vsyncpa [#allocation3 + $0x1], 0  ;;  %s2208_s18 = smov 0   ;;  %s2210_s19 = smov 0  }
   0x2   :  { %s2212_s20 = smov 0   ;;  %s2214_s21 = smov 0  }
   0x3 LB: > { %2836 = sst [smem:[#allocation5_spill]] %s2100_s18  ;;  %s2229_s22 = sadd.s32 4294967295, %s2112_s21   ;;  %s2112_s21 = sphi %s2214_s21, %s2851_s21   ;;  %s2108_s20 = sphi %s2212_s20, %s2853_s20   ;;  %s2104_s19 = sphi %s2210_s19, %s2855_s19   ;;  %s2100_s18 = sphi %s2208_s18, %s2854_s18  }
   0x4   : > { %2837 = sst [smem:[#allocation6_spill]] %s2108_s20  ;;  %s1797_s23 = sadd.s32 4294967294, %s2112_s21  }
   0x5   : > { %2838 = sst [smem:[#allocation7_spill]] %s2112_s21  ;;  %s2233_s24 = sadd.s32 1, %s2112_s21  }
   0x6   : > { %2839 = sst [smem:[#allocation8_spill]] %s2233_s24  ;;  %s365_s25 = sadd.s32 1, %s2108_s20 }
   0x7   : > { %s362_s26 = ssub.s32 %s2112_s21, %s2233_s24  ;;  %p375_p0 = scmp.ne.s32.totalorder %s2108_s20, %s2104_s19 }
   0x8   : > { %p363_p1 = scmp.eq.s32.totalorder %s362_s26, 0  ;;  %p376_p2 = scmp.eq.s32.totalorder %s2229_s22, 1 }
   0x9   : > { %p381_p3 = scmp.ne.s32.totalorder %s2104_s19, %s2100_s18  ;;  %p382_p4 = scmp.eq.s32.totalorder %s1797_s23, 1 }
   0xa   : > { %s2244_s27 = scalar_select %p363_p1, %s2108_s20, %s365_s25  }
   0xb   : > { %p2246_p5 = por %p376_p2, %p375_p0  ;;  %p2250_p6 = por %p382_p4, %p381_p3 }
   0xc   : > { %2840 = sst [smem:[#allocation9_spill]] %s2244_s27  ;;  %p1800_p7 = scmp.ge.s32.totalorder %s2112_s21, 1 }
   0xd   : > { %s2842_s29 = scalar_select %p2250_p6, 1, 0 }
   0xe   : > { %p460_p8 = scmp.lt.s32.totalorder %s2112_s21, 3 }
   0xf   : > { %2843 = sst [smem:[#allocation10_spill]] %s2842_s29 }
  0x10   : > { %p461_p9 = pnand %p1800_p7, %p460_p8 }
  0x11   : > { %v639_v0 = vld [vmem:[%s2819_s5] sm:$0xff] (!%p461_p9)  ;;  %v2114_v2 = vmov (!%p461_p9), 0   ;;  %p518_p10 = scmp.lt.s32.totalorder (!%p461_p9), %s2229_s22, 1  ;;  %v2271_v3 = vld [vmem:[%s2818_s4 + $0x8] sm:$0xff] (!%p461_p9)  ;;  %v2115_v4 = vmov (!%p461_p9), 1   ;;  %vm1282_vm0 = vcmask (!%p461_p9), 1043456  }
  0x12   : > { %464 = sbr.rel (%p461_p9) target bundleno = 825 (0x339), region = 80  ;;  %v2262_v1 = vld [vmem:[%s2818_s4] sm:$0xff] (!%p461_p9)  ;;  %1935 = vset.pattern.permute.xlu1 (!%p461_p9), %v2114_v2  ;;  %1934 = vset.pattern.permute.xlu0 (!%p461_p9), %v2114_v2  ;;  %v640_v5 = vld [vmem:[%s2819_s5 + $0x8] sm:$0xff] (!%p461_p9)  ;;  %v2295_v11 = vld [vmem:[%s2818_s4 + $0x18] sm:$0xff] (!%p461_p9)  ;;  %vm1376_vm1 = vcmask (!%p461_p9), 1045504   ;;  %v2116_v16 = vmov (!%p461_p9), 2  }
  0x13   : > { %652 = vperm.xlu1 (!%p461_p9), %1935, %v639_v0   ;;  %645 = vperm.xlu0 (!%p461_p9), %1934, %v2262_v1   ;;  %v641_v14 = vld [vmem:[%s2819_s5 + $0x10] sm:$0xff] (!%p461_p9)  ;;  %v1991_v15 = vld [vmem:[%s2822_s8] sm:$0xff] (!%p461_p9)   ;;  %vm1275_vm2 = vcmask (!%p461_p9), 195584   ;;  %v642_v19 = vld [vmem:[%s2819_s5 + $0x18] sm:$0xff] (!%p461_p9)  ;;  %v2117_v22 = vmov (!%p461_p9), 3   ;;  %vm1369_vm3 = vcmask (!%p461_p9), 97280  }
  0x14   : > { %1321 = vmatprep.mubr.bf16.mxu1 (!%p461_p9), %v2114_v2  ;;  %1072 = vmatprep.mubr.bf16.mxu0 (!%p461_p9), %v2114_v2  ;;  %v2308_v18 = vld [vmem:[%s2818_s4 + $0x10] sm:$0xff] (!%p461_p9)  ;;  %v1993_v20 = vld [vmem:[%s2822_s8 + $0x8] sm:$0xff] (!%p461_p9)   ;;  %v1994_v21 = vld [vmem:[%s2824_s10] sm:$0xff] (!%p461_p9)   ;;  %v2118_v24 = vmov (!%p461_p9), 5   ;;  %v2119_v25 = vmov (!%p461_p9), 4   ;;  %v2120_v30 = vmov (!%p461_p9), 6  }
  0x15   : > { %v1995_v23 = vld [vmem:[%s2824_s10 + $0x8] sm:$0xff] (!%p461_p9)   ;;  %v2122_v31 = vmov (!%p461_p9), 7   ;;  %v2123_v32 = vmov (!%p461_p9), 8   ;;  %v1226_v38 = vld [vmem:[%s2823_s9] sm:$0xff] (!%p461_p9)  ;;  %s2124_s27 = smov (!%p461_p9), 16   ;;  %v1228_v39 = vld [vmem:[%s2823_s9 + $0x10] sm:$0xff] (!%p461_p9) }
  0x16   : > { %v1183_v36 = vld [vmem:[%s2821_s7 + $0x8] sm:$0xff] (!%p461_p9)  ;;  %v1182_v45 = vld [vmem:[%s2821_s7] sm:$0xff] (!%p461_p9)  ;;  %v1184_v48 = vld [vmem:[%s2821_s7 + $0x10] sm:$0xff] (!%p461_p9)  ;;  %vm586_vm4 = vcmask (!%p461_p9), 7168   ;;  %vm599_vm7 = vcmask (!%p461_p9), 130048   ;;  %vm628_vm8 = vcmask (!%p461_p9), 138240  }
  0x17   : > { %1936 = vset.pattern.permute.xlu1 (!%p461_p9), %v2115_v4  ;;  %737 = vperm.xlu0 (!%p461_p9), %1934, %v2271_v3   ;;  %v1185_v55 = vld [vmem:[%s2821_s7 + $0x18] sm:$0xff] (!%p461_p9)  ;;  %v1227_v62 = vld [vmem:[%s2823_s9 + $0x8] sm:$0xff] (!%p461_p9)  ;;  %vm1033_vm9 = vcmask (!%p461_p9), 261120   ;;  %vm1503_vm10 = vcmask (!%p461_p9), 523264   ;;  %vm1621_vm11 = vcmask (!%p461_p9), 785408  }
  0x18   : > { %658 = vperm.xlu1 (!%p461_p9), %1936, %v2262_v1  }
  0x19   : > { %s2274_s30 = scalar_select %p518_p10, %s2229_s22, 1 }
  0x1b   : > { %s1881_s16 = smul.u32 24, %s2274_s30  ;;  %s1861_s17 = sshll.u32 %s2274_s30, 3  ;;  %744 = vperm.xlu0 %1934, %v640_v5  }
  0x1c   : > { %s532_s18 = scalar_lea.vmem %s2816_s2, %s1861_s17  ;;  %750 = vperm.xlu1 %1936, %v2271_v3  }
  0x1d   : > { %s527_s20 = scalar_lea.vmem %s2815_s1, %s1881_s16  ;;  %v1992_v12 = vld [vmem:[%s532_s18] sm:$0x3f]   ;;  %s2126_s16 = smov [#allocation2]  }
  0x1e   : > { %v540_v6 = vld [vmem:[%s527_s20 + $0x10] sm:$0xff]  ;;  %v1986_v7 = vld [vmem:[%s527_s20 + $0x4] ss:$8 sps:$4 sm:$0xff]   ;;  %v1989_v9 = vld [vmem:[%s527_s20] ss:$8 sps:$4 sm:$0xff]   ;;  %v1378_v17 = vsel %vm1376_vm1, %v1992_v12, 0 }
  0x1f   : > { %v1832_v8 = vcombine.high %v540_v6, %v540_v6  ;;  %v1831_v10 = vcombine.low %v540_v6, %v540_v6  ;;  %1289 = vmatprep.subr.bf16.mxu1 %v1986_v7  ;;  %921 = vperm.xlu0 %1934, %v2295_v11   ;;  %s1860_s20 = sshll.u32 %s2274_s30, 5  ;;  %s2121_s30 = smov 1  }
  0x20   : > { %1290 = vmatpush1.bf16.msra.mxu1 %v1989_v9  ;;  %1937 = vset.pattern.permute.xlu1 %v2116_v16  ;;  %s2339_s29 = scalar_lea.vmem %s2814_s0, %s1860_s20  ;;  %s2125_s20 = smov 17  }
  0x21   : > { %v1284_v13 = vsel %vm1282_vm0, %v1831_v10, 0  ;;  %1833 = vmatprep.subr.msk.bf16.mxu1 %vm1282_vm0, %v1832_v8  ;;  %758 = vperm.xlu1 %1937, %v2271_v3   ;;  %v2343_v26 = vld [vmem:[%s2339_s29 + $0x8] sm:$0xff]  ;;  %v2366_v33 = vld [vmem:[%s2339_s29 + $0x10] sm:$0xff]  ;;  %v2394_v40 = vld [vmem:[%s2339_s29 + $0x18] sm:$0xff]  ;;  %s2054_s24 = sshll.u32 %s2126_s16, 4  ;;  %s2055_s24 = int_to_ptr.vmem [resolvable:$false] %s2054_s24 }
  0x22   : > { %v2347_v27 = vunpack.c.l.bf16 %v2343_v26  ;;  %v2350_v28 = vunpack.c.h.bf16 %v2343_v26  ;;  %v2370_v34 = vunpack.c.l.bf16 %v2366_v33  ;;  %v2373_v35 = vunpack.c.h.bf16 %v2366_v33  ;;  %v2411_v44 = vld [vmem:[%s2339_s29] sm:$0xff]  ;;  %v1229_v8 = vld [vmem:[%s2823_s9 + $0x18] sm:$0xff] }
  0x23   : > { %836 = vperm.xlu0 %1934, %v641_v14   ;;  %v2398_v41 = vunpack.c.l.bf16 %v2394_v40  ;;  %v2401_v42 = vunpack.c.h.bf16 %v2394_v40  ;;  %v543_v46 = vunpack.c.l.bf16 %v2411_v44  ;;  %v544_v47 = vunpack.c.h.bf16 %v2411_v44 }
  0x24   : > { %1292 = vmatpush1.bf16.msra.mxu1 %v1284_v13  ;;  %v1944_v29 = vpack.i.bf16 %v2350_v28, %v2347_v27  ;;  %v1956_v37 = vpack.i.bf16 %v2373_v35, %v2370_v34 }
  0x25   : > { %1880 = vmatprep.subr.msk.bf16.mxu1 %vm1376_vm1, %v1992_v12  ;;  %1938 = vset.pattern.permute.xlu1 %v2114_v2  ;;  %v1966_v43 = vpack.i.bf16 %v2401_v42, %v2398_v41 }
  0x26   : > { %829 = vperm.xlu1 %1938, %v2308_v18  }
  0x27   : > { %1834 = vmatmul.mubr.msk.bf16.vlgmr.msra.gmra.mrb[0].mxu1 %vm1275_vm2, %v1991_v15  ;;  %928 = vperm.xlu0 %1934, %v642_v19  }
  0x28   : > { %1867 = vmatpush3.bf16.msra.mxu1 %v1378_v17  ;;  %1331 = vmatprep.mubr.bf16.mxu1 %v2114_v2 }
  0x2a   : > { %1939 = vset.pattern.permute.xlu1 %v2117_v22 }
  0x2b   : > { %674 = vperm.xlu1 %1939, %v2262_v1   ;;  %1941 = vset.pattern.permute.xlu0 %v2116_v16 }
  0x2c   : > { %666 = vperm.xlu0 %1941, %v2262_v1  }
  0x2f   : > { %1835 = vmatmul.mubr.msk.bf16.gmra.mrb[4].mxu1 %vm1275_vm2, %v1993_v20  ;;  %766 = vperm.xlu1 %1939, %v2271_v3  }
  0x30   : > { %1868 = vmatprep.mubr.msk.bf16.mxu1 %vm1369_vm3, %v1994_v21  ;;  %942 = vperm.xlu0 %1941, %v2295_v11  }
  0x33   : > { %1940 = vset.pattern.permute.xlu1 %v2115_v4 }
  0x34   : > { %842 = vperm.xlu1 %1940, %v2308_v18   ;;  %1950 = vset.pattern.permute.xlu0 %v2118_v24 }
  0x35   : > { %782 = vperm.xlu0 %1950, %v2271_v3  }
  0x37   : > { %1869 = vmatmul.mubr.msk.bf16.vlgmr.msra.gmra.mrb[8].mxu1 %vm1369_vm3, %v1995_v23 }
  0x38   : > { %1660 = vmatprep.mubr.bf16.mxu1 %v2114_v2  ;;  %934 = vperm.xlu1 %1940, %v2295_v11  }
  0x39   : > { %1951 = vset.pattern.permute.xlu0 %v2119_v25 }
  0x3a   : > { %682 = vperm.xlu0 %1951, %v2262_v1  }
  0x3c   : > { %1942 = vset.pattern.permute.xlu1 %v2119_v25 }
  0x3d   : > { %774 = vperm.xlu1 %1942, %v2271_v3  }
  0x3e   : > { %958 = vperm.xlu0 %1951, %v2295_v11  }
  0x41   : > { %1943 = vset.pattern.permute.xlu1 %v2116_v16 }
  0x42   : > { %850 = vperm.xlu1 %1943, %v2308_v18   ;;  %1955 = vset.pattern.permute.xlu0 %v2120_v30 }
  0x43   : > { %698 = vperm.xlu0 %1955, %v2262_v1  }
  0x46   : > { %1945 = vrot.lane.b32.xlu1 %v1944_v29, %s2121_s30 }
  0x47   : > { %1949 = vset.pattern.permute.xlu1 %v2118_v24  ;;  %974 = vperm.xlu0 %1955, %v2295_v11  }
  0x4a   : > { %690 = vperm.xlu1 %1949, %v2262_v1  }
  0x4b   : > { %1965 = vset.pattern.permute.xlu0 %v2122_v31 }
  0x4c   : > { %798 = vperm.xlu0 %1965, %v2271_v3  }
  0x4e   : > { %1952 = vset.pattern.permute.xlu1 %v2117_v22 }
  0x4f   : > { %858 = vperm.xlu1 %1952, %v2308_v18  }
  0x50   : > { %982 = vperm.xlu0 %1965, %v2295_v11  }
  0x53   : > { %950 = vperm.xlu1 %1952, %v2295_v11  }
  0x54   : > { %1972 = vset.pattern.permute.xlu0 %v2123_v32 }
  0x55   : > { %714 = vperm.xlu0 %1972, %v2262_v1  }
  0x57   : > { %1953 = vset.pattern.permute.xlu1 %v2120_v30 }
  0x58   : > { %790 = vperm.xlu1 %1953, %v2271_v3  }
  0x59   : > { %990 = vperm.xlu0 %1972, %v2295_v11  }
  0x5c   : > { %1954 = vset.pattern.permute.xlu1 %v2119_v25 }
  0x5d   : > { %866 = vperm.xlu1 %1954, %v2308_v18   ;;  %1985 = vset.pattern.permute.xlu0 %v2114_v2 }
  0x5e   : > { %1193 = vperm.xlu0 %1985, %v1183_v36  }
  0x61   : > { %1957 = vrot.lane.b32.xlu1 %v1956_v37, %s2124_s27 }
  0x62   : > { %1961 = vset.pattern.permute.xlu1 %v2122_v31  ;;  %1232 = vperm.xlu0 %1985, %v1226_v38  }
  0x65   : > { %706 = vperm.xlu1 %1961, %v2262_v1  }
  0x66   : > { %1242 = vperm.xlu0 %1985, %v1228_v39  }
  0x69   : > { %1962 = vset.pattern.permute.xlu1 %v2118_v24 }
  0x6a   : > { %874 = vperm.xlu1 %1962, %v2308_v18  }
  0x6e   : > { %966 = vperm.xlu1 %1962, %v2295_v11  }
  0x72   : > { %1963 = vset.pattern.permute.xlu1 %v2123_v32 }
  0x73   : > { %806 = vperm.xlu1 %1963, %v2271_v3  }
  0x77   : > { %1964 = vset.pattern.permute.xlu1 %v2120_v30  ;;  %v551_v30 = vlaneseq }
  0x78   : > { %882 = vperm.xlu1 %1964, %v2308_v18  }
  0x7c   : > { %1967 = vrot.lane.b32.xlu1 %v1966_v43, %s2121_s30  ;;  %s1862_s30 = sshll.u32 %s2229_s22, 10 }
  0x7d   : > { %1971 = vset.pattern.permute.xlu1 %v2122_v31  ;;  %s2766_s26 = scalar_lea.hbm %s2829_s15, %s1862_s30 }
  0x80   : > { %890 = vperm.xlu1 %1971, %v2308_v18  }
  0x84   : > { %1974 = vrot.lane.b32.xlu1 %v1966_v43, %s2124_s27 }
  0x85   : > { %1978 = vset.pattern.permute.xlu1 %v2123_v32 }
  0x88   : > { %898 = vperm.xlu1 %1978, %v2308_v18  }
  0x8c   : > { %1980 = vrot.lane.b32.xlu1 %v1966_v43, %s2125_s20  ;;  %s515_s20 = sand.u32 1, %s2104_s19  }
  0x8d   : > { %1984 = vset.pattern.permute.xlu1 %v2114_v2  ;;  %s1801_s18 = sshll.u32 %s515_s20, 6  ;;  %s2772_s22 = scalar_lea.sflag [#allocation3], %s515_s20 }
  0x8e   : > { %s517_s21 = scalar_lea.vmem [#allocation2], %s1801_s18  ;;  %s2056_s18 = scalar_lea.vmem %s2055_s24, 2048 }
  0x8f   : > { %s1711_s17 = sshll.u32 %s517_s21, 4  ;;  %s2768_s17 = int_to_ptr.vmem [resolvable:$true] %s1711_s17 }
  0x90   : > { %1188 = vperm.xlu1 %1984, %v1182_v45   ;;  %s2050_s23 = scalar_lea.vmem %s2768_s17, 1024  ;;  %p2057_p0 = scmp.lt.s32.totalorder %s2768_s17, %s2055_s24 }
  0x91   : > { %p2051_p11 = scmp.ne.s32.totalorder %s2768_s17, %s2050_s23  ;;  %p2058_p1 = scmp.lt.s32.totalorder %s2056_s18, %s2050_s23 }
  0x92   : > { %v653_v49 = vpop.permute.xlu1 %652  ;;  %v646_v50 = vpop.permute.xlu0 %645 }
  0x93   : > { %v648_v51 = vmul.f32 %v646_v50, %v543_v46  ;;  %v649_v52 = vmul.f32 %v646_v50, %v544_v47  ;;  %p2052_p12 = pnand %p2051_p11, %p2246_p5  ;;  %p2059_p2 = por %p2058_p1, %p2057_p0 }
  0x94   : > { %1198 = vperm.xlu1 %1984, %v1184_v48  }
  0x95   : > { %v655_v53 = vadd.f32 %v653_v49, %v648_v51  ;;  %v656_v54 = vadd.f32 %v653_v49, %v649_v52  ;;  %p2053_p13 = pneg %p2052_p12 }
  0x96   : > { %v738_v56 = vpop.permute.xlu0 %737 }
  0x97   : > { %v659_v57 = vpop.permute.xlu1 %658  ;;  %v740_v58 = vmul.f32 %v738_v56, %v543_v46  ;;  %v741_v59 = vmul.f32 %v738_v56, %v544_v47  ;;  %p2060_p3 = pnand %p2059_p2, %p2053_p13 }
  0x98   : > { %v661_v60 = vmul.f32 %v659_v57, %v2347_v27  ;;  %v662_v61 = vmul.f32 %v659_v57, %v2350_v28  ;;  %1203 = vperm.xlu1 %1984, %v1185_v55  }
  0x9a   : > { %v2430_v63 = vadd.f32 %v661_v60, %v655_v53  ;;  %v2432_v0 = vadd.f32 %v662_v61, %v656_v54  ;;  %v745_v1 = vpop.permute.xlu0 %744 }
  0x9b   : > { %v751_v3 = vpop.permute.xlu1 %750  ;;  %v747_v4 = vadd.f32 %v745_v1, %v740_v58  ;;  %v748_v5 = vadd.f32 %v745_v1, %v741_v59 }
  0x9c   : > { %v753_v6 = vmul.f32 %v751_v3, %v2347_v27  ;;  %v754_v7 = vmul.f32 %v751_v3, %v2350_v28  ;;  %1237 = vperm.xlu1 %1984, %v1227_v62  }
  0x9e   : > { %v755_v9 = vadd.f32 %v753_v6, %v747_v4  ;;  %v756_v10 = vadd.f32 %v754_v7, %v748_v5  ;;  %v922_v15 = vpop.permute.xlu0 %921 }
  0x9f   : > { %v924_v19 = vmul.f32 %v922_v15, %v543_v46  ;;  %v925_v20 = vmul.f32 %v922_v15, %v544_v47 }
  0xa0   : > { %v759_v11 = vpop.permute.xlu1 %758  ;;  %1247 = vperm.xlu1 %1984, %v1229_v8  }
  0xa2   : > { %v837_v18 = vpop.permute.xlu0 %836 }
  0xa5   : > { %v830_v12 = vpop.permute.xlu1 %829 }
  0xa6   : > { %v832_v13 = vmul.f32 %v830_v12, %v543_v46  ;;  %v833_v14 = vmul.f32 %v830_v12, %v544_v47  ;;  %v929_v22 = vpop.permute.xlu0 %928  ;;  %v552_v47 = vand.u32 127, %v551_v30 }
  0xa7   : > { %v931_v36 = vadd.f32 %v929_v22, %v924_v19  ;;  %v932_v37 = vadd.f32 %v929_v22, %v925_v20 }
  0xa8   : > { %v839_v23 = vadd.f32 %v837_v18, %v832_v13  ;;  %v840_v24 = vadd.f32 %v837_v18, %v833_v14  ;;  %v553_v49 = vadd.s32 128, %v552_v47  ;;  %v558_v51 = vand.u32 15, %v552_v47  ;;  %v1440_v47 = vld [vmem:[%s2825_s11 + $0x8] sm:$0xff] }
  0xa9   : > { %1450 = vperm.xlu1 %1984, %v1440_v47  }
  0xaa   : > { %v675_v16 = vpop.permute.xlu1 %674  ;;  %v565_v52 = vand.u32 15, %v553_v49  ;;  %vm2451_vm5 = vcmp.ne.s32.totalorder %v558_v51, 0  ;;  %v1439_v49 = vld [vmem:[%s2825_s11] sm:$0xff] }
  0xab   : > { %v667_v58 = vpop.permute.xlu0 %666  ;;  %v677_v5 = vmul.f32 %v675_v16, %v2370_v34  ;;  %v678_v6 = vmul.f32 %v675_v16, %v2373_v35  ;;  %1445 = vperm.xlu0 %1985, %v1439_v49  }
  0xac   : > { %vm2455_vm6 = vcmp.ne.s32.totalorder %v565_v52, 0 }
  0xae   : > { %v767_v17 = vpop.permute.xlu1 %766 }
  0xaf   : > { %v769_v7 = vmul.f32 %v767_v17, %v2370_v34  ;;  %v770_v8 = vmul.f32 %v767_v17, %v2373_v35  ;;  %v943_v17 = vpop.permute.xlu0 %942 }
  0xb3   : > { %v843_v21 = vpop.permute.xlu1 %842 }
  0xb4   : > { %v845_v25 = vmul.f32 %v843_v21, %v2347_v27  ;;  %v846_v29 = vmul.f32 %v843_v21, %v2350_v28 }
  0xb6   : > { %v847_v31 = vadd.f32 %v845_v25, %v839_v23  ;;  %v2441_v32 = vadd.f32 %v846_v29, %v840_v24 }
  0xb7   : > { %v935_v38 = vpop.permute.xlu1 %934 }
  0xb8   : > { %v937_v39 = vmul.f32 %v935_v38, %v2347_v27  ;;  %v938_v43 = vmul.f32 %v935_v38, %v2350_v28 }
  0xba   : > { %v2445_v45 = vadd.f32 %v937_v39, %v931_v36  ;;  %v2447_v46 = vadd.f32 %v938_v43, %v932_v37 }
  0xbc   : > { %v775_v48 = vpop.permute.xlu1 %774 }
  0xc1   : > { %v2449_v50 = vpop.permute.xlu1 %850 }
  0xc5   : > { %v1946_v53 = vpop.permute.xlu1 %1945 }
  0xc6   : > { %v1948_v27 = vunpack.i.h.bf16 %v1946_v53  ;;  %v1947_v55 = vunpack.i.l.bf16 %v1946_v53  ;;  %v1441_v53 = vld [vmem:[%s2825_s11 + $0x10] sm:$0xff] }
  0xc7   : > { %1455 = vperm.xlu0 %1985, %v1441_v53  }
  0xc8   : > { %v587_v56 = vsel %vm586_vm4, %v1947_v55, %v1948_v27  ;;  %v590_v57 = vsel %vm586_vm4, 0.0, %v1947_v55  ;;  %v1588_v55 = vld [vmem:[%s2828_s14 + $0x8] sm:$0xff] }
  0xc9   : > { %v591_v59 = vsel %vm2451_vm5, %v590_v57, 0.0  ;;  %v2465_v60 = vsel %vm2455_vm6, %v587_v56, 0.0  ;;  %v2467_v61 = vpop.permute.xlu1 %690  ;;  %v1587_v57 = vld [vmem:[%s2828_s14] sm:$0xff] }
  0xca   : > { %v669_v62 = vmul.f32 %v667_v58, %v591_v59  ;;  %v761_v1 = vmul.f32 %v759_v11, %v591_v59  ;;  %v670_v3 = vmul.f32 %v667_v58, %v2465_v60  ;;  %v762_v4 = vmul.f32 %v759_v11, %v2465_v60  ;;  %v1590_v58 = vld [vmem:[%s2828_s14 + $0x18] sm:$0xff] }
  0xcb   : > { %v853_v18 = vmul.f32 %v2449_v50, %v591_v59  ;;  %1593 = vperm.xlu0 %1985, %v1587_v57  }
  0xcc   : > { %v671_v12 = vadd.f32 %v669_v62, %v2430_v63  ;;  %v763_v13 = vadd.f32 %v761_v1, %v755_v9  ;;  %v672_v14 = vadd.f32 %v670_v3, %v2432_v0  ;;  %v764_v15 = vadd.f32 %v762_v4, %v756_v10  ;;  %v2486_v63 = vpop.permute.xlu0 %782  ;;  %v1589_v62 = vld [vmem:[%s2828_s14 + $0x10] sm:$0xff] }
  0xcd   : > { %v2482_v16 = vadd.f32 %v853_v18, %v847_v31  ;;  %v945_v4 = vmul.f32 %v943_v17, %v591_v59  ;;  %v785_v59 = vmul.f32 %v2486_v63, %v2398_v41 }
  0xce   : > { %v859_v19 = vpop.permute.xlu1 %858  ;;  %v2478_v20 = vadd.f32 %v677_v5, %v671_v12  ;;  %v771_v11 = vadd.f32 %v769_v7, %v763_v13  ;;  %v2480_v21 = vadd.f32 %v678_v6, %v672_v14  ;;  %v772_v22 = vadd.f32 %v770_v8, %v764_v15 }
  0xcf   : > { %1603 = vperm.xlu0 %1985, %v1589_v62   ;;  %v946_v5 = vmul.f32 %v943_v17, %v2465_v60  ;;  %v854_v13 = vmul.f32 %v2449_v50, %v2465_v60  ;;  %v947_v15 = vadd.f32 %v945_v4, %v2445_v45  ;;  %v861_v17 = vmul.f32 %v859_v19, %v2370_v34 }
  0xd0   : > { %v683_v29 = vpop.permute.xlu0 %682  ;;  %v862_v50 = vmul.f32 %v859_v19, %v2373_v35 }
  0xd2   : > { %v951_v23 = vpop.permute.xlu1 %950 }
  0xd4   : > { %v959_v51 = vpop.permute.xlu0 %958 }
  0xd7   : > { %v2484_v24 = vpop.permute.xlu1 %790 }
  0xd8   : > { %v2510_v27 = vpop.permute.xlu0 %698 }
  0xdc   : > { %v867_v9 = vpop.permute.xlu1 %866  ;;  %v2528_v3 = vpop.permute.xlu0 %974 }
  0xe0   : > { %v1958_v0 = vpop.permute.xlu1 %1957  ;;  %v2535_v8 = vpop.permute.xlu0 %798 }
  0xe1   : > { %v1960_v10 = vunpack.i.h.bf16 %v1958_v0  ;;  %v1959_v25 = vunpack.i.l.bf16 %v1958_v0  ;;  %v953_v0 = vmul.f32 %v951_v23, %v2370_v34 }
  0xe3   : > { %v603_v30 = vsel %vm599_vm7, 0.0, %v1959_v25  ;;  %v600_v36 = vsel %vm599_vm7, %v1959_v25, %v1960_v10  ;;  %v954_v10 = vmul.f32 %v951_v23, %v2373_v35  ;;  %v693_v23 = vmul.f32 %v2467_v61, %v2398_v41 }
  0xe4   : > { %v777_v37 = vmul.f32 %v775_v48, %v603_v30  ;;  %v778_v38 = vmul.f32 %v775_v48, %v600_v36  ;;  %v2490_v31 = vpop.permute.xlu1 %706  ;;  %v1442_v48 = vld [vmem:[%s2825_s11 + $0x18] sm:$0xff]  ;;  %v686_v18 = vmul.f32 %v683_v29, %v600_v36  ;;  %v685_v60 = vmul.f32 %v683_v29, %v603_v30  ;;  %v983_v57 = vpop.permute.xlu0 %982 }
  0xe5   : > { %1460 = vperm.xlu1 %1984, %v1442_v48   ;;  %v961_v47 = vmul.f32 %v959_v51, %v603_v30  ;;  %v962_v49 = vmul.f32 %v959_v51, %v600_v36  ;;  %v869_v48 = vmul.f32 %v867_v9, %v603_v30  ;;  %v955_v35 = vadd.f32 %v953_v0, %v947_v15 }
  0xe6   : > { %v2492_v39 = vadd.f32 %v777_v37, %v771_v11  ;;  %v2494_v43 = vadd.f32 %v778_v38, %v772_v22  ;;  %v948_v22 = vadd.f32 %v946_v5, %v2447_v46  ;;  %v856_v38 = vadd.f32 %v854_v13, %v2441_v32 }
  0xe7   : > { %v688_v53 = vadd.f32 %v686_v18, %v2480_v21  ;;  %v870_v46 = vmul.f32 %v867_v9, %v600_v36  ;;  %v786_v29 = vmul.f32 %v2486_v63, %v2401_v42  ;;  %v694_v21 = vmul.f32 %v2467_v61, %v2401_v42 }
  0xe8   : > { %v956_v19 = vadd.f32 %v954_v10, %v948_v22  ;;  %v863_v9 = vadd.f32 %v861_v17, %v2482_v16  ;;  %v864_v30 = vadd.f32 %v862_v50, %v856_v38  ;;  %v687_v36 = vadd.f32 %v685_v60, %v2478_v20  ;;  %v715_v38 = vpop.permute.xlu0 %714 }
  0xe9   : > { %v2505_v52 = vpop.permute.xlu1 %874  ;;  %1598 = vperm.xlu1 %1984, %v1588_v55   ;;  %v963_v62 = vadd.f32 %v961_v47, %v955_v35  ;;  %v696_v16 = vadd.f32 %v694_v21, %v688_v53 }
  0xea   : > { %v964_v4 = vadd.f32 %v962_v49, %v956_v19  ;;  %v871_v15 = vadd.f32 %v869_v48, %v863_v9  ;;  %v872_v18 = vadd.f32 %v870_v46, %v864_v30  ;;  %v877_v61 = vmul.f32 %v2505_v52, %v2398_v41 }
  0xeb   : > { %v878_v20 = vmul.f32 %v2505_v52, %v2401_v42  ;;  %v695_v49 = vadd.f32 %v693_v23, %v687_v36 }
  0xec   : > { %v879_v48 = vadd.f32 %v877_v61, %v871_v15  ;;  %v991_v15 = vpop.permute.xlu0 %990 }
  0xed   : > { %v2515_v56 = vpop.permute.xlu1 %966  ;;  %1608 = vperm.xlu1 %1984, %v1590_v58   ;;  %v880_v53 = vadd.f32 %v878_v20, %v872_v18 }
  0xee   : > { %v969_v17 = vmul.f32 %v2515_v56, %v2398_v41  ;;  %v970_v0 = vmul.f32 %v2515_v56, %v2401_v42  ;;  %v787_v41 = vadd.f32 %v785_v59, %v2492_v39 }
  0xf0   : > { %v971_v46 = vadd.f32 %v969_v17, %v963_v62 }
  0xf2   : > { %v2526_v1 = vpop.permute.xlu1 %806 }
  0xf7   : > { %v2531_v6 = vpop.permute.xlu1 %882 }
  0xfa   : > { %v2533_v7 = vpop.f32.mrb[0].mxu1 }
  0xfb   : > { %v2537_v12 = vpop.f32.mrb[1].mxu1  ;;  %v1968_v25 = vpop.permute.xlu1 %1967 }
  0xfc   : > { %v2541_v14 = vpop.f32.mrb[2].mxu1  ;;  %v1970_v37 = vunpack.i.h.bf16 %v1968_v25  ;;  %v1969_v45 = vunpack.i.l.bf16 %v1968_v25  ;;  %v788_v25 = vadd.f32 %v786_v29, %v2494_v43 }
  0xfd   : > { %v2546_v11 = vpop.f32.mrb[3].mxu1 }
  0xfe   : > { %v610_v55 = vsel %vm586_vm4, %v1969_v45, %v1970_v37  ;;  %v613_v34 = vsel %vm586_vm4, 0.0, %v1969_v45 }
  0xff   : > { %v2561_v32 = vpop.permute.xlu1 %890  ;;  %v614_v5 = vsel %vm2451_vm5, %v613_v34, 0.0  ;;  %v615_v63 = vsel %vm2455_vm6, %v610_v55, 0.0 }
 0x100   : > { %v885_v50 = vmul.f32 %v2531_v6, %v614_v5  ;;  %v702_v60 = vmul.f32 %v2510_v27, %v615_v63  ;;  %v701_v47 = vmul.f32 %v2510_v27, %v614_v5  ;;  %v793_v52 = vmul.f32 %v2484_v24, %v614_v5 }
 0x101   : > { %v886_v42 = vmul.f32 %v2531_v6, %v615_v63  ;;  %v977_v56 = vmul.f32 %v2528_v3, %v614_v5  ;;  %v978_v55 = vmul.f32 %v2528_v3, %v615_v63  ;;  %v972_v27 = vadd.f32 %v970_v0, %v964_v4 }
 0x102   : > { %v2563_v51 = vpop.f32.mrb[4].mxu1  ;;  %v887_v19 = vadd.f32 %v885_v50, %v879_v48  ;;  %v794_v23 = vmul.f32 %v2484_v24, %v615_v63  ;;  %v704_v29 = vadd.f32 %v702_v60, %v696_v16  ;;  %v703_v21 = vadd.f32 %v701_v47, %v695_v49  ;;  %v2619_v49 = vpop.permute.xlu0 %1193 }
 0x103   : > { %v2569_v58 = vpop.f32.mrb[5].mxu1  ;;  %v1975_v10 = vpop.permute.xlu1 %1974  ;;  %v795_v9 = vadd.f32 %v793_v52, %v787_v41  ;;  %v888_v36 = vadd.f32 %v886_v42, %v880_v53  ;;  %v979_v3 = vadd.f32 %v977_v56, %v971_v46  ;;  %v980_v18 = vadd.f32 %v978_v55, %v972_v27 }
 0x104   : > { %v2575_v13 = vpop.f32.mrb[6].mxu1  ;;  %v1977_v37 = vunpack.i.h.bf16 %v1975_v10  ;;  %v1976_v45 = vunpack.i.l.bf16 %v1975_v10  ;;  %v796_v10 = vadd.f32 %v794_v23, %v788_v25 }
 0x105   : > { %v2579_v22 = vpop.f32.mrb[7].mxu1 }
 0x106   : > { %v623_v43 = vsel %vm599_vm7, 0.0, %v1976_v45  ;;  %v620_v34 = vsel %vm599_vm7, %v1976_v45, %v1977_v37 }
 0x107   : > { %v899_v35 = vpop.permute.xlu1 %898  ;;  %v709_v6 = vmul.f32 %v2490_v31, %v623_v43  ;;  %v801_v59 = vmul.f32 %v2535_v8, %v623_v43  ;;  %v985_v62 = vmul.f32 %v983_v57, %v623_v43  ;;  %v986_v5 = vmul.f32 %v983_v57, %v620_v34 }
 0x108   : > { %v710_v63 = vmul.f32 %v2490_v31, %v620_v34  ;;  %v802_v61 = vmul.f32 %v2535_v8, %v620_v34  ;;  %v893_v50 = vmul.f32 %v2561_v32, %v623_v43  ;;  %v894_v60 = vmul.f32 %v2561_v32, %v620_v34 }
 0x109   : > { %v711_v37 = vadd.f32 %v709_v6, %v703_v21  ;;  %v803_v45 = vadd.f32 %v801_v59, %v795_v9  ;;  %v987_v31 = vadd.f32 %v985_v62, %v979_v3  ;;  %v988_v47 = vadd.f32 %v986_v5, %v980_v18  ;;  %v1233_v62 = vpop.permute.xlu0 %1232 }
 0x10a   : > { %v2599_v39 = vpop.f32.mrb[8].mxu1  ;;  %v712_v48 = vadd.f32 %v710_v63, %v704_v29  ;;  %v804_v42 = vadd.f32 %v802_v61, %v796_v10  ;;  %v895_v6 = vadd.f32 %v893_v50, %v887_v19  ;;  %v896_v28 = vadd.f32 %v894_v60, %v888_v36 }
 0x10b   : > { %v2603_v30 = vpop.f32.mrb[9].mxu1  ;;  %v1981_v24 = vpop.permute.xlu1 %1980  ;;  %v1324_v61 = vadd.f32 %v2533_v7, %v1233_v62 }
 0x10c   : > { %v2605_v4 = vpop.f32.mrb[10].mxu1  ;;  %v1983_v17 = vunpack.i.h.bf16 %v1981_v24  ;;  %v1982_v0 = vunpack.i.l.bf16 %v1981_v24 }
 0x10d   : > { %v1430_v16 = vpack.c.bf16 %v2605_v4, %v2599_v39  ;;  %v2611_v20 = vpop.f32.mrb[11].mxu1  ;;  %v1243_v10 = vpop.permute.xlu0 %1242  ;;  %v1342_v60 = vmax.f32 %v1324_v61, 0.0 }
 0x10e   : > { %v1429_v57 = vpack.c.bf16 %v2611_v20, %v2603_v30  ;;  %v629_v8 = vsel %vm628_vm8, %v1982_v0, %v1983_v17  ;;  %v632_v52 = vsel %vm628_vm8, 0.0, %v1982_v0  ;;  %v1326_v0 = vadd.f32 %v2537_v12, %v1233_v62 }
 0x10f   : > { %v633_v25 = vsel %vm2451_vm5, %v632_v52, 0.0  ;;  %v634_v41 = vsel %vm2455_vm6, %v629_v8, 0.0  ;;  %v2625_v56 = vpop.permute.xlu1 %1188 }
 0x110   : > { %v901_v32 = vmul.f32 %v899_v35, %v633_v25  ;;  %v902_v43 = vmul.f32 %v899_v35, %v634_v41  ;;  %v993_v53 = vmul.f32 %v991_v15, %v633_v25  ;;  %v994_v46 = vmul.f32 %v991_v15, %v634_v41 }
 0x111   : > { %v718_v55 = vmul.f32 %v715_v38, %v634_v41  ;;  %v810_v34 = vmul.f32 %v2526_v1, %v634_v41  ;;  %v717_v27 = vmul.f32 %v715_v38, %v633_v25  ;;  %v809_v23 = vmul.f32 %v2526_v1, %v633_v25 }
 0x112   : > { %v2629_v54 = vadd.f32 %v993_v53, %v987_v31  ;;  %v2631_v59 = vadd.f32 %v994_v46, %v988_v47  ;;  %v2645_v19 = vadd.f32 %v902_v43, %v896_v28  ;;  %v2649_v15 = vadd.f32 %v901_v32, %v895_v6 }
 0x113   : > { %v2633_v29 = vadd.f32 %v718_v55, %v712_v48  ;;  %v2635_v21 = vadd.f32 %v810_v34, %v804_v42  ;;  %v2637_v9 = vadd.f32 %v717_v27, %v711_v37  ;;  %v2639_v35 = vadd.f32 %v809_v23, %v803_v45  ;;  %v2641_v3 = vpop.permute.xlu1 %1198 }
 0x114   : > { %v1813_v38 = vmul.f32 -1.442695, %v2629_v54  ;;  %v1814_v1 = vmul.f32 -1.442695, %v2631_v59  ;;  %v1812_v17 = vmul.f32 -1.442695, %v2645_v19  ;;  %v1334_v45 = vadd.f32 %v2563_v51, %v1243_v10 }
 0x115   : > { %v1808_v5 = vmul.f32 -1.442695, %v2633_v29  ;;  %v1810_v36 = vmul.f32 -1.442695, %v2635_v21  ;;  %v1807_v18 = vmul.f32 -1.442695, %v2637_v9  ;;  %v1336_v31 = vadd.f32 %v2569_v58, %v1243_v10 }
 0x116   : > { %2018 = vpow2.f32 %v1813_v38  ;;  %v1809_v24 = vmul.f32 -1.442695, %v2639_v35  ;;  %v1811_v50 = vmul.f32 -1.442695, %v2649_v15  ;;  %v1343_v47 = vmax.f32 %v1326_v0, 0.0 }
 0x117   : > { %2020 = vpow2.f32 %v1814_v1  ;;  %v2653_v63 = vpop.permute.xlu1 %1203  ;;  %v1346_v25 = vmax.f32 %v1334_v45, 0.0  ;;  %v1347_v41 = vmax.f32 %v1336_v31, 0.0 }
 0x118   : > { %2022 = vpow2.f32 %v1808_v5 }
 0x119   : > { %2024 = vpow2.f32 %v1810_v36 }
 0x11a   : > { %2026 = vpow2.f32 %v1807_v18 }
 0x11b   : > { %2028 = vpow2.f32 %v1809_v24  ;;  %v1238_v37 = vpop.permute.xlu1 %1237 }
 0x11c   : > { %2030 = vpow2.f32 %v1812_v17  ;;  %v1328_v7 = vadd.f32 %v2541_v14, %v1238_v37  ;;  %v1330_v8 = vadd.f32 %v2546_v11, %v1238_v37 }
 0x11d   : > { %2032 = vpow2.f32 %v1811_v50 }
 0x11e   : > { %v1344_v12 = vmax.f32 %v1328_v7, 0.0  ;;  %v1345_v52 = vmax.f32 %v1330_v8, 0.0 }
 0x11f   : > { %v1248_v48 = vpop.permute.xlu1 %1247 }
 0x120   : > { %v2019_v42 = vpop.eup %2018  ;;  %v2663_v32 = vpack.c.bf16 %v1344_v12, %v1342_v60  ;;  %v1338_v43 = vadd.f32 %v2575_v13, %v1248_v48  ;;  %v1340_v51 = vadd.f32 %v2579_v22, %v1248_v48  ;;  %v2667_v58 = vpack.c.bf16 %v1345_v52, %v1343_v47 }
 0x121   : > { %v2021_v53 = vpop.eup %2020  ;;  %v1003_v46 = vadd.f32 1.0, %v2019_v42 }
 0x122   : > { %v2023_v14 = vpop.eup %2022  ;;  %v1004_v55 = vadd.f32 1.0, %v2021_v53  ;;  %v1348_v11 = vmax.f32 %v1338_v43, 0.0  ;;  %v1349_v34 = vmax.f32 %v1340_v51, 0.0  ;;  %v2006_v43 = vld [vmem:[%s2826_s12 + $0x10] ss:$8 sps:$4 sm:$0xff]   ;;  %v2009_v53 = vld [vmem:[%s2817_s3 + $0x8] sm:$0xff]  }
 0x123   : > { %v2025_v27 = vpop.eup %2024  ;;  %2034 = vrcp.f32 %v1003_v46  ;;  %v728_v23 = vadd.f32 1.0, %v2023_v14  ;;  %v2012_v51 = vld [vmem:[%s2826_s12 + $0x24] ss:$8 sps:$4 sm:$0xff]   ;;  %v2010_v46 = vld [vmem:[%s2826_s12 + $0x20] ss:$8 sps:$4 sm:$0xff]  }
 0x124   : > { %v2027_v6 = vpop.eup %2026  ;;  %2036 = vrcp.f32 %v1004_v55  ;;  %v820_v28 = vadd.f32 1.0, %v2025_v27  ;;  %v2669_v38 = vpack.c.bf16 %v1348_v11, %v1346_v25  ;;  %v2671_v1 = vpack.c.bf16 %v1349_v34, %v1347_v41  ;;  %v2015_v14 = vld [vmem:[%s2826_s12 + $0x34] ss:$8 sps:$4 sm:$0xff]   ;;  %v2013_v55 = vld [vmem:[%s2826_s12 + $0x30] ss:$8 sps:$4 sm:$0xff]  }
 0x125   : > { %v2029_v13 = vpop.eup %2028  ;;  %2038 = vrcp.f32 %v728_v23  ;;  %v727_v22 = vadd.f32 1.0, %v2027_v6 }
 0x126   : > { %v2031_v62 = vpop.eup %2030  ;;  %2040 = vrcp.f32 %v820_v28  ;;  %v819_v5 = vadd.f32 1.0, %v2029_v13 }
 0x127   : > { %v2033_v36 = vpop.eup %2032  ;;  %2042 = vrcp.f32 %v727_v22  ;;  %v912_v18 = vadd.f32 1.0, %v2031_v62 }
 0x128   : > { %2044 = vrcp.f32 %v819_v5  ;;  %v911_v24 = vadd.f32 1.0, %v2033_v36 }
 0x129   : > { %2046 = vrcp.f32 %v912_v18 }
 0x12a   : > { %2048 = vrcp.f32 %v911_v24 }
 0x12d   : > { %v2035_v61 = vpop.eup %2034 }
 0x12e   : > { %v2037_v17 = vpop.eup %2036  ;;  %v1009_v8 = vmul.f32 %v2035_v61, %v2629_v54  ;;  %v1996_v54 = vld [vmem:[%s2820_s6] sm:$0xff]  }
 0x12f   : > { %v2039_v0 = vpop.eup %2038  ;;  %v1010_v31 = vmul.f32 %v2037_v17, %v2631_v59  ;;  %v1822_v59 = vcombine.high %v2411_v44, %v2343_v26 }
 0x130   : > { %v2041_v10 = vpop.eup %2040  ;;  %v734_v50 = vmul.f32 %v2039_v0, %v2633_v29 }
 0x131   : > { %v2043_v60 = vpop.eup %2042  ;;  %v826_v37 = vmul.f32 %v2041_v10, %v2635_v21 }
 0x132   : > { %v2045_v45 = vpop.eup %2044  ;;  %v733_v47 = vmul.f32 %v2043_v60, %v2637_v9  ;;  %v1821_v9 = vcombine.low %v2411_v44, %v2343_v26  ;;  %v1999_v26 = vld [vmem:[%s2820_s6 + $0x8] sm:$0xff]   ;;  %v2002_v44 = vld [vmem:[%s2817_s3] sm:$0xff]  }
 0x133   : > { %v2047_v7 = vpop.eup %2046  ;;  %v1012_v12 = vpack.c.bf16 %v826_v37, %v734_v50  ;;  %v825_v52 = vmul.f32 %v2045_v45, %v2639_v35  ;;  %v1824_v35 = vcombine.high %v2366_v33, %v2394_v40  ;;  %v1446_v37 = vpop.permute.xlu0 %1445 }
 0x134   : > { %v2049_v25 = vpop.eup %2048  ;;  %v918_v41 = vmul.f32 %v2047_v7, %v2645_v19  ;;  %v1823_v19 = vcombine.low %v2366_v33, %v2394_v40  ;;  %v2003_v33 = vld [vmem:[%s2826_s12] ss:$8 sps:$4 sm:$0xff]   ;;  %v2008_v40 = vld [vmem:[%s2826_s12 + $0x14] ss:$8 sps:$4 sm:$0xff]  }
 0x135   : > { %1040 = vmatprep.subr.bf16.mxu0 %v1012_v12  ;;  %v1011_v48 = vpack.c.bf16 %v825_v52, %v733_v47  ;;  %v917_v29 = vmul.f32 %v2049_v25, %v2649_v15  ;;  %v2005_v15 = vld [vmem:[%s2826_s12 + $0x4] ss:$8 sps:$4 sm:$0xff]  }
 0x136   : > { %v1014_v42 = vpack.c.bf16 %v1010_v31, %v918_v41 }
 0x137   : > { %1041 = vmatpush1.bf16.msra.mxu0 %v1011_v48  ;;  %v1013_v21 = vpack.c.bf16 %v1009_v8, %v917_v29  ;;  %v1451_v8 = vpop.permute.xlu1 %1450 }
 0x138   : > { %1042 = vmatprep.subr.bf16.mxu0 %v1014_v42 }
 0x13b   : > { %1043 = vmatpush1.bf16.msra.mxu0 %v1013_v21 }
 0x13c   : > { %1129 = vmatprep.subr.bf16.mxu0 %v1822_v59 }
 0x13e   : > { %1817 = vmatmul.mubr.msk.bf16.vlgmr.msra.gmra.mrb[0].mxu0 %vm1033_vm9, %v1996_v54 }
 0x13f   : > { %1130 = vmatpush1.bf16.msra.mxu0 %v1821_v9  ;;  %1082 = vmatprep.mubr.bf16.mxu0 %v2114_v2 }
 0x140   : > { %1131 = vmatprep.subr.bf16.mxu0 %v1824_v35 }
 0x143   : > { %1132 = vmatpush1.bf16.msra.mxu0 %v1823_v19 }
 0x144   : > { %1510 = vmatprep.subr.bf16.mxu0 %v2005_v15 }
 0x146   : > { %1818 = vmatmul.mubr.msk.bf16.gmra.mrb[4].mxu0 %vm1033_vm9, %v1999_v26  ;;  %v1456_v59 = vpop.permute.xlu0 %1455 }
 0x147   : > { %1161 = vmatprep.mubr.bf16.mxu0 %v2114_v2 }
 0x14e   : > { %1825 = vmatmul.mubr.msk.bf16.vlgmr.msra.gmra.mrb[0].mxu0 %vm1033_vm9, %v2002_v44 }
 0x14f   : > { %1511 = vmatpush1.bf16.msra.mxu0 %v2003_v33  ;;  %1171 = vmatprep.mubr.bf16.mxu0 %v2114_v2 }
 0x150   : > { %1512 = vmatprep.subr.bf16.mxu0 %v2008_v40 }
 0x153   : > { %1513 = vmatpush1.bf16.msra.mxu0 %v2006_v43 }
 0x154   : > { %1514 = vmatprep.subr.bf16.mxu0 %v2012_v51 }
 0x156   : > { %1826 = vmatmul.mubr.msk.bf16.gmra.mrb[4].mxu0 %vm1033_vm9, %v2009_v53 }
 0x157   : > { %1515 = vmatpush1.bf16.msra.mxu0 %v2010_v46  ;;  %1542 = vmatprep.mubr.bf16.mxu0 %v2114_v2 }
 0x158   : > { %1516 = vmatprep.subr.bf16.mxu0 %v2015_v14  ;;  %v2016_v14 = vld [vmem:[%s2827_s13] sm:$0xff]  }
 0x15b   : > { %1517 = vmatpush1.bf16.msra.mxu0 %v2013_v55  ;;  %v1594_v55 = vpop.permute.xlu0 %1593 }
 0x15e   : > { %1849 = vmatmul.mubr.msk.bf16.vlgmr.msra.gmra.mrb[8].mxu0 %vm1503_vm10, %v1429_v57 }
 0x15f   : > { %1552 = vmatprep.mubr.bf16.mxu0 %v2114_v2 }
 0x164   : > { %v1461_v15 = vpop.permute.xlu1 %1460 }
 0x166   : > { %1850 = vmatmul.mubr.msk.bf16.gmra.mrb[12].mxu0 %vm1503_vm10, %v1430_v16 }
 0x221   : > { %v1163_v11 = vpop.f32.mrb[0].mxu0 }
 0x222   : > { %v1206_v34 = vadd.f32 %v2625_v56, %v1163_v11  ;;  %v1165_v27 = vpop.f32.mrb[1].mxu0 }
 0x223   : > { %v1207_v23 = vadd.f32 %v2625_v56, %v1165_v27  ;;  %v1167_v6 = vpop.f32.mrb[2].mxu0 }
 0x224   : > { %v1208_v28 = vadd.f32 %v2619_v49, %v1167_v6  ;;  %v1169_v13 = vpop.f32.mrb[3].mxu0  ;;  %v1214_v30 = vmax.f32 %v1206_v34, 0.0 }
 0x225   : > { %v1209_v22 = vadd.f32 %v2619_v49, %v1169_v13  ;;  %v1215_v57 = vmax.f32 %v1207_v23, 0.0  ;;  %v1599_v23 = vpop.permute.xlu1 %1598 }
 0x226   : > { %v1216_v20 = vmax.f32 %v1208_v28, 0.0 }
 0x227   : > { %v1217_v62 = vmax.f32 %v1209_v22, 0.0 }
 0x228   : > { %v1571_v5 = vpack.c.bf16 %v1216_v20, %v1214_v30 }
 0x229   : > { %v1572_v36 = vpack.c.bf16 %v1217_v62, %v1215_v57  ;;  %v1173_v39 = vpop.f32.mrb[4].mxu0 }
 0x22a   : > { %v1210_v4 = vadd.f32 %v2641_v3, %v1173_v39  ;;  %v1175_v16 = vpop.f32.mrb[5].mxu0 }
 0x22b   : > { %v1211_v18 = vadd.f32 %v2641_v3, %v1175_v16  ;;  %v1177_v24 = vpop.f32.mrb[6].mxu0  ;;  %1628 = vmatprep.subr.bf16.mxu1 %v1572_v36  ;;  %v1609_v16 = vpop.permute.xlu1 %1608 }
 0x22c   : > { %v1212_v56 = vadd.f32 %v2653_v63, %v1177_v24  ;;  %v1179_v61 = vpop.f32.mrb[7].mxu0  ;;  %1629 = vmatpush1.bf16.msra.mxu1 %v1571_v5  ;;  %v1218_v17 = vmax.f32 %v1210_v4, 0.0  ;;  %v1604_v5 = vpop.permute.xlu0 %1603 }
 0x22d   : > { %v1213_v49 = vadd.f32 %v2653_v63, %v1179_v61  ;;  %v1219_v10 = vmax.f32 %v1211_v18, 0.0 }
 0x22e   : > { %v1220_v0 = vmax.f32 %v1212_v56, 0.0 }
 0x22f   : > { %v1221_v50 = vmax.f32 %v1213_v49, 0.0 }
 0x230   : > { %v1573_v60 = vpack.c.bf16 %v1220_v0, %v1218_v17 }
 0x231   : > { %v1574_v45 = vpack.c.bf16 %v1221_v50, %v1219_v10  ;;  %v1544_v31 = vpop.f32.mrb[8].mxu0 }
 0x232   : > { %v1545_v47 = vadd.f32 %v1544_v31, %v1446_v37  ;;  %v1546_v7 = vpop.f32.mrb[9].mxu0 }
 0x233   : > { %v1547_v3 = vadd.f32 %v1546_v7, %v1446_v37  ;;  %v1548_v12 = vpop.f32.mrb[10].mxu0  ;;  %1630 = vmatprep.subr.bf16.mxu1 %v1574_v45 }
 0x234   : > { %v1549_v52 = vadd.f32 %v1548_v12, %v1451_v8  ;;  %v1550_v25 = vpop.f32.mrb[11].mxu0  ;;  %1631 = vmatpush1.bf16.msra.mxu1 %v1573_v60  ;;  %v1563_v63 = vmax.f32 %v1545_v47, 0.0 }
 0x235   : > { %v1551_v41 = vadd.f32 %v1550_v25, %v1451_v8  ;;  %1632 = vmatprep.subr.bf16.mxu1 %v2667_v58  ;;  %v1564_v29 = vmax.f32 %v1547_v3, 0.0 }
 0x236   : > { %v1565_v48 = vmax.f32 %v1549_v52, 0.0 }
 0x237   : > { %v1566_v42 = vmax.f32 %v1551_v41, 0.0 }
 0x238   : > { %v1579_v21 = vpack.c.bf16 %v1565_v48, %v1563_v63  ;;  %1633 = vmatpush1.bf16.msra.mxu1 %v2663_v32 }
 0x239   : > { %v1580_v54 = vpack.c.bf16 %v1566_v42, %v1564_v29  ;;  %v1554_v9 = vpop.f32.mrb[12].mxu0  ;;  %1634 = vmatprep.subr.bf16.mxu1 %v2671_v1 }
 0x23a   : > { %v1555_v35 = vadd.f32 %v1554_v9, %v1456_v59  ;;  %v1556_v19 = vpop.f32.mrb[13].mxu0 }
 0x23b   : > { %v1557_v26 = vadd.f32 %v1556_v19, %v1456_v59  ;;  %v1558_v44 = vpop.f32.mrb[14].mxu0 }
 0x23c   : > { %v1559_v33 = vadd.f32 %v1558_v44, %v1461_v15  ;;  %v1560_v40 = vpop.f32.mrb[15].mxu0  ;;  %1635 = vmatpush1.bf16.msra.mxu1 %v2669_v38  ;;  %v1567_v43 = vmax.f32 %v1555_v35, 0.0  ;;  %v2017_v38 = vld [vmem:[%s2827_s13 + $0x8] sm:$0xff]  }
 0x23d   : > { %v1561_v58 = vadd.f32 %v1560_v40, %v1461_v15  ;;  %1636 = vmatprep.subr.bf16.mxu1 %v1580_v54  ;;  %v1568_v51 = vmax.f32 %v1557_v26, 0.0 }
 0x23e   : > { %v1569_v32 = vmax.f32 %v1559_v33, 0.0 }
 0x23f   : > { %v1570_v53 = vmax.f32 %v1561_v58, 0.0 }
 0x240   : > { %v1581_v46 = vpack.c.bf16 %v1569_v32, %v1567_v43  ;;  %1637 = vmatpush1.bf16.msra.mxu1 %v1579_v21 }
 0x241   : > { %v1582_v1 = vpack.c.bf16 %v1570_v53, %v1568_v51 }
 0x243   : > { %1638 = vmatprep.subr.bf16.mxu1 %v1582_v1 }
 0x244   : > { %1639 = vmatpush1.bf16.msra.mxu1 %v1581_v46 }
 0x247   : > { %1853 = vmatmul.mubr.msk.bf16.vlgmr.msra.gmra.mrb[12].mxu1 %vm1621_vm11, %v2016_v14 }
 0x248   : > { %1670 = vmatprep.mubr.bf16.mxu1 %v2114_v2 }
 0x24f   : > { %1854 = vmatmul.mubr.msk.bf16.gmra.mrb[16].mxu1 %vm1621_vm11, %v2017_v38 }
 0x31a   : > { %v1662_v11 = vpop.f32.mrb[12].mxu1 }
 0x31b   : > { %v1663_v34 = vadd.f32 %v1662_v11, %v1594_v55  ;;  %v1664_v27 = vpop.f32.mrb[13].mxu1 }
 0x31c   : > { %v1665_v6 = vadd.f32 %v1664_v27, %v1594_v55  ;;  %v1666_v28 = vpop.f32.mrb[14].mxu1 }
 0x31d   : > { %v1681_v13 = vmax.f32 %v1663_v34, 0.0  ;;  %v1667_v22 = vadd.f32 %v1666_v28, %v1599_v23  ;;  %v1668_v30 = vpop.f32.mrb[15].mxu1 }
 0x31e   : > { %v1682_v20 = vmax.f32 %v1665_v6, 0.0  ;;  %v1669_v2 = vadd.f32 %v1668_v30, %v1599_v23 }
 0x31f   : > { %1689 = vst [vmem:[%s517_s21] sm:$0xff] %v1681_v13  ;;  %v1683_v57 = vmax.f32 %v1667_v22, 0.0 }
 0x320   : > { %1690 = vst [vmem:[%s517_s21 + $0x8] sm:$0xff] %v1682_v20  ;;  %v1684_v62 = vmax.f32 %v1669_v2, 0.0 }
 0x321   : > { %1691 = vst [vmem:[%s517_s21 + $0x10] sm:$0xff] %v1683_v57 }
 0x322   : > { %1692 = vst [vmem:[%s517_s21 + $0x18] sm:$0xff] %v1684_v62  ;;  %v1672_v36 = vpop.f32.mrb[16].mxu1 }
 0x323   : > { %v1673_v39 = vadd.f32 %v1672_v36, %v1604_v5  ;;  %v1674_v4 = vpop.f32.mrb[17].mxu1 }
 0x324   : > { %v1675_v18 = vadd.f32 %v1674_v4, %v1604_v5  ;;  %v1676_v24 = vpop.f32.mrb[18].mxu1 }
 0x325   : > { %v1685_v56 = vmax.f32 %v1673_v39, 0.0  ;;  %v1677_v61 = vadd.f32 %v1676_v24, %v1609_v16  ;;  %v1678_v49 = vpop.f32.mrb[19].mxu1 }
 0x326   : > { %v1686_v17 = vmax.f32 %v1675_v18, 0.0  ;;  %v1679_v0 = vadd.f32 %v1678_v49, %v1609_v16 }
 0x327   : > { %1693 = vst [vmem:[%s517_s21 + $0x20] sm:$0xff] %v1685_v56  ;;  %v1687_v10 = vmax.f32 %v1677_v61, 0.0 }
 0x328   : > { %1694 = vst [vmem:[%s517_s21 + $0x28] sm:$0xff] %v1686_v17  ;;  %v1688_v50 = vmax.f32 %v1679_v0, 0.0 }
 0x329   : > { %1695 = vst [vmem:[%s517_s21 + $0x30] sm:$0xff] %v1687_v10 }
 0x32a   : > { %1696 = vst [vmem:[%s517_s21 + $0x38] sm:$0xff] %v1688_v50 }
 0x32b   : > { %2063 = shalt.err (!%p2060_p3)
}
 0x32c   : > { %s2064_s20 = scalar_lea.hbm %s2766_s26, 1024  ;;  %s2068_s29 = scalar_lea.hbm %s2829_s15, 2048 }
 0x32d   : > { %p2065_p4 = scmp.ne.s32.totalorder %s2766_s26, %s2064_s20  ;;  %p2069_p9 = scmp.lt.u32.totalorder %s2766_s26, %s2829_s15 }
 0x32e   : > { %p2070_p10 = scmp.lt.u32.totalorder %s2068_s29, %s2064_s20  ;;  %p2072_p12 = scmp.lt.u32.totalorder %s2064_s20, %s2766_s26 }
 0x32f   : > { %p2066_p7 = pnand %p2065_p4, %p2246_p5 }
 0x330   : > { %p2071_p11 = por %p2070_p10, %p2069_p9 }
 0x331   : > { %p2067_p8 = pneg %p2066_p7 }
 0x332   : > { %p2073_p13 = por %p2072_p12, %p2071_p11 }
 0x334   : > { %p2074_p0 = pnand %p2073_p13, %p2067_p8 }
 0x336   : > { %2077 = shalt.err (!%p2074_p0)
}
 0x337   : > { %s2127_s23 = smov 256  }
 0x338   : > { %1882 = dma.vmem_to_hbm [thread:$0]  (%p2246_p5), %s2768_s17, 1024, %s2766_s26, %s2772_s22, %s2127_s23, %s2127_s23, %s2124_s27  }
 0x339 PF: > { %s2848_s24 = sld [smem:[#allocation7_spill]]  ;;  %s2849_s18 = sld [smem:[#allocation5_spill]] }
 0x33f   : > { %p1888_p1 = scmp.ge.s32.totalorder %s2848_s24, 2  ;;  %s1726_s30 = sand.u32 1, %s2849_s18  }
 0x340   : > { %s1727_s20 = scalar_lea.sflag [#allocation3], %s1726_s30 }
 0x341   : > { %p1885_p2 = pnand %p1888_p1, %p2250_p6 }
 0x343   : > { %2095 = dma.done.wait (!%p1885_p2), %s1727_s20, 1024  }
 0x344   : > { %2097 = vsyncadd (!%p1885_p2), %s1727_s20, 4294966272  ;;  %s2851_s21 = sld [smem:[#allocation8_spill]]  ;;  %s2852_s29 = sld [smem:[#allocation6_spill]] }
 0x345   : > { %s2853_s20 = sld [smem:[#allocation9_spill]]  ;;  %s2854_s18 = smov %s2104_s19 }
 0x34a   : > { %p25_p3 = scmp.ge.s32.totalorder %s2851_s21, 4   ;;  %s2855_s19 = smov %s2852_s29 }
 0x34c   :  { %27 = sbr.rel (!%p25_p3) target bundleno = 3 (0x3), region = 121 }
 0x353   :  { %1732 = vsyncpa [#allocation3], 1 }
 0x354   :  { %1734 = vsyncpa [#allocation3 + $0x1], 1 }

</bundles_post_ra>
